<compile_context>
chip_gen: v7x
topology: tpu7x:2x2x1
jax: 0.10.0
libtpu: 0.0.40
codegen_flags: <defaults>
</compile_context>

<pallas_src>
import functools

import jax
import jax.numpy as jnp
from jax.experimental import pallas as pl
from jax.experimental.pallas import tpu as pltpu

HIDDEN_SIZE = 128   # must be a multiple of 128 (tutorial uses 256, also OK)
OUTPUT_SIZE = 256   # vocabulary size
SEQ_LEN = 8         # number of decode steps fused into one pallas_call


def _decoder_seq_kernel(tok_ref,            # scalar prefetch: (T,) int32 (SMEM)
                        emb_ref,            # (V, H)   f32  embedding table (resident)
                        h0_ref,             # (1, H)   f32  initial hidden
                        wg_ref,             # (2H, 4H) bf16 fused GRU weight [rz|n_ih|n_hh]
                        brz_ref,            # (1, 2H)  f32  b_ih+b_hh for r,z
                        bin_ref,            # (1, H)   f32  b_ih for n
                        bhn_ref,            # (1, H)   f32  b_hh for n
                        wout_ref,           # (H, V)   bf16 W_out^T
                        bout_ref,           # (1, V)   f32  b_out
                        logp_ref,           # out: (T, V) log-probs
                        hout_ref,           # out: (1, H) final hidden
                        hseq_ref):          # scratch: VMEM (T, H) f32 hidden history
    T = logp_ref.shape[0]
    H = h0_ref.shape[-1]

    # Small loop-invariant biases: load once, reuse across the unrolled loop.
    b_rz = brz_ref[...]
    b_in = bin_ref[...]
    b_hn = bhn_ref[...]

    h = h0_ref[...]                                            # (1, H) f32

    # Fully-unrolled recurrence: no per-step grid overhead, static store
    # offsets, LLO scheduler sees all T steps at once.
    for t in range(T):
        tok = tok_ref[t]                                       # scalar from SMEM
        # Embedding row gather (dynamic sublane slice of resident table) + relu.
        x = jnp.maximum(emb_ref[pl.ds(tok, 1), :], 0.0)        # (1, H) f32
        # Fused GRU matmul: [x | h] @ [W_rz_fused | W_in | W_hn], K = 2H.
        xh = jnp.concatenate([x, h], axis=-1).astype(jnp.bfloat16)       # (1, 2H)
        g = jnp.dot(xh, wg_ref[...], preferred_element_type=jnp.float32)  # (1, 4H)
        # g[:, :2H] = gi_rz + gh_rz ; g[:, 2H:3H] = gi_n ; g[:, 3H:] = gh_n
        rz = jax.nn.sigmoid(g[:, :2 * H] + b_rz)
        r, z = rz[:, :H], rz[:, H:]
        n = jnp.tanh(g[:, 2 * H:3 * H] + b_in + r * (g[:, 3 * H:] + b_hn))
        h = (1.0 - z) * n + z * h                              # (1, H) f32
        hseq_ref[pl.ds(t, 1), :] = h                           # static offset store

    hout_ref[...] = h

    # Output projection + log-softmax, batched over all T steps (off the
    # recurrence critical path: one MXU call, 8-sublane VPU/EUP work, one
    # (T, V) writeback).
    logits = jnp.dot(hseq_ref[...].astype(jnp.bfloat16), wout_ref[...],
                     preferred_element_type=jnp.float32) + bout_ref[...]   # (T, V)
    m = jnp.max(logits, axis=-1, keepdims=True)
    shifted = logits - m
    lse = jnp.log(jnp.sum(jnp.exp(shifted), axis=-1, keepdims=True))
    logp_ref[...] = shifted - lse


@functools.partial(jax.jit, static_argnames=("hidden_size", "output_size"))
def decoder_rnn_decode(tokens, hidden, params, *, hidden_size, output_size):
    """Run T teacher-forced steps of DecoderRNN.forward in one pallas_call.

    tokens: (T,) int32 token ids; hidden: (1, 1, H) f32.
    Returns (log_probs (T, V), final hidden (1, 1, H)).
    """
    emb_table, w_ih_t, w_hh_t, b_ih, b_hh, w_out_t, b_out = params
    H, V = hidden_size, output_size
    tokens = jnp.asarray(tokens, jnp.int32).reshape(-1)
    T = tokens.shape[0]

    # Fused GRU weight (2H, 4H): [x | h] @ W -> [gi_rz + gh_rz | gi_n | gh_n].
    # Gate order is PyTorch's [r | z | n]; H % 128 == 0 keeps slices lane-aligned.
    zeros = jnp.zeros((H, H), jnp.float32)
    w_top = jnp.concatenate([w_ih_t[:, :2 * H], w_ih_t[:, 2 * H:], zeros], axis=1)
    w_bot = jnp.concatenate([w_hh_t[:, :2 * H], zeros, w_hh_t[:, 2 * H:]], axis=1)
    w_gru = jnp.concatenate([w_top, w_bot], axis=0).astype(jnp.bfloat16)   # (2H, 4H)

    # Pre-fold biases for the r/z gates; keep n-gate biases separate (r gates b_hh).
    b_rz = (b_ih[:, :2 * H] + b_hh[:, :2 * H]).astype(jnp.float32)
    b_in = b_ih[:, 2 * H:].astype(jnp.float32)
    b_hn = b_hh[:, 2 * H:].astype(jnp.float32)

    w_out_bf = w_out_t.astype(jnp.bfloat16)
    h0 = hidden.reshape(1, H).astype(jnp.float32)

    const = lambda i, tok: (0, 0)   # grid-invariant -> VMEM-resident

    grid_spec = pltpu.PrefetchScalarGridSpec(
        num_scalar_prefetch=1,                    # tokens -> SMEM
        grid=(1,),                                # whole decode in one grid step
        in_specs=[
            pl.BlockSpec((V, H), const),          # embedding table (resident)
            pl.BlockSpec((1, H), const),          # h0
            pl.BlockSpec((2 * H, 4 * H), const),  # fused GRU weight
            pl.BlockSpec((1, 2 * H), const),      # b_rz
            pl.BlockSpec((1, H), const),          # b_in
            pl.BlockSpec((1, H), const),          # b_hn
            pl.BlockSpec((H, V), const),          # W_out^T
            pl.BlockSpec((1, V), const),          # b_out
        ],
        out_specs=(
            pl.BlockSpec((T, V), const),          # all log-probs, written once
            pl.BlockSpec((1, H), const),          # final hidden
        ),
        scratch_shapes=[pltpu.VMEM((T, H), jnp.float32)],
    )

    log_probs, h_final = pl.pallas_call(
        _decoder_seq_kernel,
        out_shape=(
            jax.ShapeDtypeStruct((T, V), jnp.float32),
            jax.ShapeDtypeStruct((1, H), jnp.float32),
        ),
        grid_spec=grid_spec,
        compiler_params=pltpu.CompilerParams(
            dimension_semantics=("arbitrary",),
            vmem_limit_bytes=4 * 1024 * 1024,
        ),
    )(tokens, emb_table.astype(jnp.float32), h0, w_gru, b_rz, b_in, b_hn,
      w_out_bf, b_out.astype(jnp.float32))

    return log_probs, h_final.reshape(1, 1, H)


def decoder_rnn_forward(token, hidden, params, *, hidden_size, output_size):
    """Exact single-step API of DecoderRNN.forward(input, hidden)."""
    tok = jnp.asarray(token, jnp.int32).reshape(1)
    lp, h_new = decoder_rnn_decode(tok, hidden, params,
                                   hidden_size=hidden_size, output_size=output_size)
    return lp.reshape(1, output_size), h_new


def init_params(key, hidden_size, output_size):
    """Deterministic synthetic parameters (PyTorch-style uniform init bounds)."""
    ks = jax.random.split(key, 7)
    H, V = hidden_size, output_size
    k = 1.0 / jnp.sqrt(H)
    emb_table = jax.random.normal(ks[0], (V, H), jnp.float32)
    # Stored pre-transposed for the kernel: (H, 3H), gate order [r|z|n].
    w_ih_t = jax.random.uniform(ks[1], (H, 3 * H), jnp.float32, -k, k)
    w_hh_t = jax.random.uniform(ks[2], (H, 3 * H), jnp.float32, -k, k)
    b_ih = jax.random.uniform(ks[3], (1, 3 * H), jnp.float32, -k, k)
    b_hh = jax.random.uniform(ks[4], (1, 3 * H), jnp.float32, -k, k)
    w_out_t = jax.random.uniform(ks[5], (H, V), jnp.float32, -k, k)
    b_out = jax.random.uniform(ks[6], (1, V), jnp.float32, -k, k)
    return emb_table, w_ih_t, w_hh_t, b_ih, b_hh, w_out_t, b_out


def _reference_decode(tokens, hidden, params, hidden_size, output_size):
    """Pure-JAX reference (same math / same bf16 matmul operands) for checking."""
    emb_table, w_ih_t, w_hh_t, b_ih, b_hh, w_out_t, b_out = params
    H = hidden_size
    w_ih_bf = w_ih_t.astype(jnp.bfloat16)
    w_hh_bf = w_hh_t.astype(jnp.bfloat16)
    w_out_bf = w_out_t.astype(jnp.bfloat16)
    h = hidden.reshape(1, H).astype(jnp.float32)
    outs = []
    for t in range(int(tokens.shape[0])):
        x = jnp.maximum(emb_table[tokens[t]].reshape(1, H), 0.0)
        gi = jnp.dot(x.astype(jnp.bfloat16), w_ih_bf,
                     preferred_element_type=jnp.float32) + b_ih
        gh = jnp.dot(h.astype(jnp.bfloat16), w_hh_bf,
                     preferred_element_type=jnp.float32) + b_hh
        r = jax.nn.sigmoid(gi[:, :H] + gh[:, :H])
        z = jax.nn.sigmoid(gi[:, H:2 * H] + gh[:, H:2 * H])
        n = jnp.tanh(gi[:, 2 * H:] + r * gh[:, 2 * H:])
        h = (1.0 - z) * n + z * h
        logits = jnp.dot(h.astype(jnp.bfloat16), w_out_bf,
                         preferred_element_type=jnp.float32) + b_out
        outs.append(jax.nn.log_softmax(logits, axis=1))
    return jnp.concatenate(outs, axis=0), h.reshape(1, 1, H)


if __name__ == "__main__":
    key = jax.random.PRNGKey(0)
    k_param, k_hidden, k_tok = jax.random.split(key, 3)

    params = init_params(k_param, HIDDEN_SIZE, OUTPUT_SIZE)
    tokens = jax.random.randint(k_tok, (SEQ_LEN,), 0, OUTPUT_SIZE, dtype=jnp.int32)
    hidden = jax.random.normal(k_hidden, (1, 1, HIDDEN_SIZE), jnp.float32)

    log_probs, h_final = decoder_rnn_decode(
        tokens, hidden, params, hidden_size=HIDDEN_SIZE, output_size=OUTPUT_SIZE)
    jax.block_until_ready((log_probs, h_final))

    ref_lp, ref_h = _reference_decode(tokens, hidden, params, HIDDEN_SIZE, OUTPUT_SIZE)
    assert log_probs.shape == (SEQ_LEN, OUTPUT_SIZE)
    assert h_final.shape == (1, 1, HIDDEN_SIZE)
    assert jnp.allclose(log_probs, ref_lp, atol=2e-3, rtol=2e-3)
    assert jnp.allclose(h_final, ref_h, atol=2e-3, rtol=2e-3)

    # Single-step API parity with the PyTorch module's forward(input, hidden).
    lp1, h1 = decoder_rnn_forward(tokens[0].reshape(1, 1), hidden, params,
                                  hidden_size=HIDDEN_SIZE, output_size=OUTPUT_SIZE)
    assert lp1.shape == (1, OUTPUT_SIZE) and h1.shape == (1, 1, HIDDEN_SIZE)
    assert jnp.allclose(lp1[0], ref_lp[0], atol=2e-3, rtol=2e-3)

    print("KERNEL_OK")
</pallas_src>

<mosaic_0001>
module attributes {stable_mosaic.version = 11 : i64} {
  func.func @_decoder_seq_kernel(%arg0: i32, %arg1: memref<8xi32, #tpu.memory_space<smem>>, %arg2: memref<256x128xf32, #tpu.memory_space<vmem>>, %arg3: memref<1x128xf32, #tpu.memory_space<vmem>>, %arg4: memref<256x512xbf16, #tpu.memory_space<vmem>>, %arg5: memref<1x256xf32, #tpu.memory_space<vmem>>, %arg6: memref<1x128xf32, #tpu.memory_space<vmem>>, %arg7: memref<1x128xf32, #tpu.memory_space<vmem>>, %arg8: memref<128x256xbf16, #tpu.memory_space<vmem>>, %arg9: memref<1x256xf32, #tpu.memory_space<vmem>>, %arg10: memref<8x256xf32, #tpu.memory_space<vmem>>, %arg11: memref<1x128xf32, #tpu.memory_space<vmem>>, %arg12: memref<8x128xf32, #tpu.memory_space<vmem>>) attributes {dimension_semantics = [#tpu.dimension_semantics<arbitrary>], iteration_bounds = array<i64: 1>, scalar_prefetch = 1 : i64, scratch_operands = 1 : i64, tpu.core_type = #tpu.core_type<tc>, window_params = [{pipeline_mode = #tpu.pipeline_mode<synchronous>, transform_indices = @transform_0, window_bounds = array<i64: 256, 128>}, {pipeline_mode = #tpu.pipeline_mode<synchronous>, transform_indices = @transform_1, window_bounds = array<i64: 1, 128>}, {pipeline_mode = #tpu.pipeline_mode<synchronous>, transform_indices = @transform_2, window_bounds = array<i64: 256, 512>}, {pipeline_mode = #tpu.pipeline_mode<synchronous>, transform_indices = @transform_3, window_bounds = array<i64: 1, 256>}, {pipeline_mode = #tpu.pipeline_mode<synchronous>, transform_indices = @transform_4, window_bounds = array<i64: 1, 128>}, {pipeline_mode = #tpu.pipeline_mode<synchronous>, transform_indices = @transform_5, window_bounds = array<i64: 1, 128>}, {pipeline_mode = #tpu.pipeline_mode<synchronous>, transform_indices = @transform_6, window_bounds = array<i64: 128, 256>}, {pipeline_mode = #tpu.pipeline_mode<synchronous>, transform_indices = @transform_7, window_bounds = array<i64: 1, 256>}, {pipeline_mode = #tpu.pipeline_mode<synchronous>, transform_indices = @transform_8, window_bounds = array<i64: 8, 256>}, {pipeline_mode = #tpu.pipeline_mode<synchronous>, transform_indices = @transform_9, window_bounds = array<i64: 1, 128>}]} {
    %c0 = arith.constant 0 : index
    %c0_0 = arith.constant 0 : index
    %0 = vector.load %arg5[%c0, %c0_0] : memref<1x256xf32, #tpu.memory_space<vmem>>, vector<1x256xf32>
    %c0_1 = arith.constant 0 : index
    %c0_2 = arith.constant 0 : index
    %1 = vector.load %arg6[%c0_1, %c0_2] : memref<1x128xf32, #tpu.memory_space<vmem>>, vector<1x128xf32>
    %c0_3 = arith.constant 0 : index
    %c0_4 = arith.constant 0 : index
    %2 = vector.load %arg7[%c0_3, %c0_4] : memref<1x128xf32, #tpu.memory_space<vmem>>, vector<1x128xf32>
    %c0_5 = arith.constant 0 : index
    %c0_6 = arith.constant 0 : index
    %3 = vector.load %arg3[%c0_5, %c0_6] : memref<1x128xf32, #tpu.memory_space<vmem>>, vector<1x128xf32>
    %c0_7 = arith.constant 0 : index
    %4 = memref.load %arg1[%c0_7] : memref<8xi32, #tpu.memory_space<smem>>
    %5 = arith.index_cast %4 : i32 to index
    %c0_8 = arith.constant 0 : index
    %6 = vector.load %arg2[%5, %c0_8] : memref<256x128xf32, #tpu.memory_space<vmem>>, vector<1x128xf32>
    %cst = arith.constant 0.000000e+00 : f32
    %7 = vector.broadcast %cst : f32 to vector<1x128xf32>
    %8 = arith.maximumf %6, %7 : vector<1x128xf32>
    %9 = tpu.concatenate %8, %3 in 1 : vector<1x128xf32>, vector<1x128xf32> -> vector<1x256xf32>
    %10 = arith.truncf %9 : vector<1x256xf32> to vector<1x256xbf16>
    %c0_9 = arith.constant 0 : index
    %c0_10 = arith.constant 0 : index
    %11 = vector.load %arg4[%c0_9, %c0_10] : memref<256x512xbf16, #tpu.memory_space<vmem>>, vector<256x512xbf16>
    %cst_11 = arith.constant dense<0.000000e+00> : vector<1x512xf32>
    %12 = tpu.matmul %10, %11, %cst_11 {dimension_numbers = #tpu.dot_dimension_numbers<[1], [0], [0], [1], [0, 0, 1, 1], [], []>} : vector<1x256xbf16>, vector<256x512xbf16>, vector<1x512xf32> -> vector<1x512xf32>
    %13 = vector.extract_strided_slice %12 {offsets = [0, 0], sizes = [1, 256], strides = [1, 1]} : vector<1x512xf32> to vector<1x256xf32>
    %14 = arith.addf %13, %0 : vector<1x256xf32>
    %15 = arith.negf %14 : vector<1x256xf32>
    %16 = math.exp %15 : vector<1x256xf32>
    %cst_12 = arith.constant 1.000000e+00 : f32
    %17 = vector.broadcast %cst_12 : f32 to vector<1x256xf32>
    %18 = arith.addf %17, %16 : vector<1x256xf32>
    %19 = arith.divf %17, %18 : vector<1x256xf32>
    %20 = vector.extract_strided_slice %19 {offsets = [0, 0], sizes = [1, 128], strides = [1, 1]} : vector<1x256xf32> to vector<1x128xf32>
    %21 = vector.extract_strided_slice %19 {offsets = [0, 128], sizes = [1, 128], strides = [1, 1]} : vector<1x256xf32> to vector<1x128xf32>
    %22 = vector.extract_strided_slice %12 {offsets = [0, 256], sizes = [1, 128], strides = [1, 1]} : vector<1x512xf32> to vector<1x128xf32>
    %23 = arith.addf %22, %1 : vector<1x128xf32>
    %24 = vector.extract_strided_slice %12 {offsets = [0, 384], sizes = [1, 128], strides = [1, 1]} : vector<1x512xf32> to vector<1x128xf32>
    %25 = arith.addf %24, %2 : vector<1x128xf32>
    %26 = arith.mulf %20, %25 : vector<1x128xf32>
    %27 = arith.addf %23, %26 : vector<1x128xf32>
    %28 = math.tanh %27 : vector<1x128xf32>
    %cst_13 = arith.constant 1.000000e+00 : f32
    %29 = vector.broadcast %cst_13 : f32 to vector<1x128xf32>
    %30 = arith.subf %29, %21 : vector<1x128xf32>
    %31 = arith.mulf %30, %28 : vector<1x128xf32>
    %32 = arith.mulf %21, %3 : vector<1x128xf32>
    %33 = arith.addf %31, %32 : vector<1x128xf32>
    %c0_14 = arith.constant 0 : index
    %c0_15 = arith.constant 0 : index
    %34 = vector.load %arg12[%c0_14, %c0_15] : memref<8x128xf32, #tpu.memory_space<vmem>>, vector<1x128xf32>
    tpu.vector_store %arg12[%c0_14, %c0_15], %33 {strides = array<i32>} : memref<8x128xf32, #tpu.memory_space<vmem>>, vector<1x128xf32>,
    %c1 = arith.constant 1 : index
    %35 = memref.load %arg1[%c1] : memref<8xi32, #tpu.memory_space<smem>>
    %36 = arith.index_cast %35 : i32 to index
    %c0_16 = arith.constant 0 : index
    %37 = vector.load %arg2[%36, %c0_16] : memref<256x128xf32, #tpu.memory_space<vmem>>, vector<1x128xf32>
    %cst_17 = arith.constant 0.000000e+00 : f32
    %38 = vector.broadcast %cst_17 : f32 to vector<1x128xf32>
    %39 = arith.maximumf %37, %38 : vector<1x128xf32>
    %40 = tpu.concatenate %39, %33 in 1 : vector<1x128xf32>, vector<1x128xf32> -> vector<1x256xf32>
    %41 = arith.truncf %40 : vector<1x256xf32> to vector<1x256xbf16>
    %c0_18 = arith.constant 0 : index
    %c0_19 = arith.constant 0 : index
    %42 = vector.load %arg4[%c0_18, %c0_19] : memref<256x512xbf16, #tpu.memory_space<vmem>>, vector<256x512xbf16>
    %cst_20 = arith.constant dense<0.000000e+00> : vector<1x512xf32>
    %43 = tpu.matmul %41, %42, %cst_20 {dimension_numbers = #tpu.dot_dimension_numbers<[1], [0], [0], [1], [0, 0, 1, 1], [], []>} : vector<1x256xbf16>, vector<256x512xbf16>, vector<1x512xf32> -> vector<1x512xf32>
    %44 = vector.extract_strided_slice %43 {offsets = [0, 0], sizes = [1, 256], strides = [1, 1]} : vector<1x512xf32> to vector<1x256xf32>
    %45 = arith.addf %44, %0 : vector<1x256xf32>
    %46 = arith.negf %45 : vector<1x256xf32>
    %47 = math.exp %46 : vector<1x256xf32>
    %cst_21 = arith.constant 1.000000e+00 : f32
    %48 = vector.broadcast %cst_21 : f32 to vector<1x256xf32>
    %49 = arith.addf %48, %47 : vector<1x256xf32>
    %50 = arith.divf %48, %49 : vector<1x256xf32>
    %51 = vector.extract_strided_slice %50 {offsets = [0, 0], sizes = [1, 128], strides = [1, 1]} : vector<1x256xf32> to vector<1x128xf32>
    %52 = vector.extract_strided_slice %50 {offsets = [0, 128], sizes = [1, 128], strides = [1, 1]} : vector<1x256xf32> to vector<1x128xf32>
    %53 = vector.extract_strided_slice %43 {offsets = [0, 256], sizes = [1, 128], strides = [1, 1]} : vector<1x512xf32> to vector<1x128xf32>
    %54 = arith.addf %53, %1 : vector<1x128xf32>
    %55 = vector.extract_strided_slice %43 {offsets = [0, 384], sizes = [1, 128], strides = [1, 1]} : vector<1x512xf32> to vector<1x128xf32>
    %56 = arith.addf %55, %2 : vector<1x128xf32>
    %57 = arith.mulf %51, %56 : vector<1x128xf32>
    %58 = arith.addf %54, %57 : vector<1x128xf32>
    %59 = math.tanh %58 : vector<1x128xf32>
    %cst_22 = arith.constant 1.000000e+00 : f32
    %60 = vector.broadcast %cst_22 : f32 to vector<1x128xf32>
    %61 = arith.subf %60, %52 : vector<1x128xf32>
    %62 = arith.mulf %61, %59 : vector<1x128xf32>
    %63 = arith.mulf %52, %33 : vector<1x128xf32>
    %64 = arith.addf %62, %63 : vector<1x128xf32>
    %c1_23 = arith.constant 1 : index
    %c0_24 = arith.constant 0 : index
    %65 = vector.load %arg12[%c1_23, %c0_24] : memref<8x128xf32, #tpu.memory_space<vmem>>, vector<1x128xf32>
    tpu.vector_store %arg12[%c1_23, %c0_24], %64 {strides = array<i32>} : memref<8x128xf32, #tpu.memory_space<vmem>>, vector<1x128xf32>,
    %c2 = arith.constant 2 : index
    %66 = memref.load %arg1[%c2] : memref<8xi32, #tpu.memory_space<smem>>
    %67 = arith.index_cast %66 : i32 to index
    %c0_25 = arith.constant 0 : index
    %68 = vector.load %arg2[%67, %c0_25] : memref<256x128xf32, #tpu.memory_space<vmem>>, vector<1x128xf32>
    %cst_26 = arith.constant 0.000000e+00 : f32
    %69 = vector.broadcast %cst_26 : f32 to vector<1x128xf32>
    %70 = arith.maximumf %68, %69 : vector<1x128xf32>
    %71 = tpu.concatenate %70, %64 in 1 : vector<1x128xf32>, vector<1x128xf32> -> vector<1x256xf32>
    %72 = arith.truncf %71 : vector<1x256xf32> to vector<1x256xbf16>
    %c0_27 = arith.constant 0 : index
    %c0_28 = arith.constant 0 : index
    %73 = vector.load %arg4[%c0_27, %c0_28] : memref<256x512xbf16, #tpu.memory_space<vmem>>, vector<256x512xbf16>
    %cst_29 = arith.constant dense<0.000000e+00> : vector<1x512xf32>
    %74 = tpu.matmul %72, %73, %cst_29 {dimension_numbers = #tpu.dot_dimension_numbers<[1], [0], [0], [1], [0, 0, 1, 1], [], []>} : vector<1x256xbf16>, vector<256x512xbf16>, vector<1x512xf32> -> vector<1x512xf32>
    %75 = vector.extract_strided_slice %74 {offsets = [0, 0], sizes = [1, 256], strides = [1, 1]} : vector<1x512xf32> to vector<1x256xf32>
    %76 = arith.addf %75, %0 : vector<1x256xf32>
    %77 = arith.negf %76 : vector<1x256xf32>
    %78 = math.exp %77 : vector<1x256xf32>
    %cst_30 = arith.constant 1.000000e+00 : f32
    %79 = vector.broadcast %cst_30 : f32 to vector<1x256xf32>
    %80 = arith.addf %79, %78 : vector<1x256xf32>
    %81 = arith.divf %79, %80 : vector<1x256xf32>
    %82 = vector.extract_strided_slice %81 {offsets = [0, 0], sizes = [1, 128], strides = [1, 1]} : vector<1x256xf32> to vector<1x128xf32>
    %83 = vector.extract_strided_slice %81 {offsets = [0, 128], sizes = [1, 128], strides = [1, 1]} : vector<1x256xf32> to vector<1x128xf32>
    %84 = vector.extract_strided_slice %74 {offsets = [0, 256], sizes = [1, 128], strides = [1, 1]} : vector<1x512xf32> to vector<1x128xf32>
    %85 = arith.addf %84, %1 : vector<1x128xf32>
    %86 = vector.extract_strided_slice %74 {offsets = [0, 384], sizes = [1, 128], strides = [1, 1]} : vector<1x512xf32> to vector<1x128xf32>
    %87 = arith.addf %86, %2 : vector<1x128xf32>
    %88 = arith.mulf %82, %87 : vector<1x128xf32>
    %89 = arith.addf %85, %88 : vector<1x128xf32>
    %90 = math.tanh %89 : vector<1x128xf32>
    %cst_31 = arith.constant 1.000000e+00 : f32
    %91 = vector.broadcast %cst_31 : f32 to vector<1x128xf32>
    %92 = arith.subf %91, %83 : vector<1x128xf32>
    %93 = arith.mulf %92, %90 : vector<1x128xf32>
    %94 = arith.mulf %83, %64 : vector<1x128xf32>
    %95 = arith.addf %93, %94 : vector<1x128xf32>
    %c2_32 = arith.constant 2 : index
    %c0_33 = arith.constant 0 : index
    %96 = vector.load %arg12[%c2_32, %c0_33] : memref<8x128xf32, #tpu.memory_space<vmem>>, vector<1x128xf32>
    tpu.vector_store %arg12[%c2_32, %c0_33], %95 {strides = array<i32>} : memref<8x128xf32, #tpu.memory_space<vmem>>, vector<1x128xf32>,
    %c3 = arith.constant 3 : index
    %97 = memref.load %arg1[%c3] : memref<8xi32, #tpu.memory_space<smem>>
    %98 = arith.index_cast %97 : i32 to index
    %c0_34 = arith.constant 0 : index
    %99 = vector.load %arg2[%98, %c0_34] : memref<256x128xf32, #tpu.memory_space<vmem>>, vector<1x128xf32>
    %cst_35 = arith.constant 0.000000e+00 : f32
    %100 = vector.broadcast %cst_35 : f32 to vector<1x128xf32>
    %101 = arith.maximumf %99, %100 : vector<1x128xf32>
    %102 = tpu.concatenate %101, %95 in 1 : vector<1x128xf32>, vector<1x128xf32> -> vector<1x256xf32>
    %103 = arith.truncf %102 : vector<1x256xf32> to vector<1x256xbf16>
    %c0_36 = arith.constant 0 : index
    %c0_37 = arith.constant 0 : index
    %104 = vector.load %arg4[%c0_36, %c0_37] : memref<256x512xbf16, #tpu.memory_space<vmem>>, vector<256x512xbf16>
    %cst_38 = arith.constant dense<0.000000e+00> : vector<1x512xf32>
    %105 = tpu.matmul %103, %104, %cst_38 {dimension_numbers = #tpu.dot_dimension_numbers<[1], [0], [0], [1], [0, 0, 1, 1], [], []>} : vector<1x256xbf16>, vector<256x512xbf16>, vector<1x512xf32> -> vector<1x512xf32>
    %106 = vector.extract_strided_slice %105 {offsets = [0, 0], sizes = [1, 256], strides = [1, 1]} : vector<1x512xf32> to vector<1x256xf32>
    %107 = arith.addf %106, %0 : vector<1x256xf32>
    %108 = arith.negf %107 : vector<1x256xf32>
    %109 = math.exp %108 : vector<1x256xf32>
    %cst_39 = arith.constant 1.000000e+00 : f32
    %110 = vector.broadcast %cst_39 : f32 to vector<1x256xf32>
    %111 = arith.addf %110, %109 : vector<1x256xf32>
    %112 = arith.divf %110, %111 : vector<1x256xf32>
    %113 = vector.extract_strided_slice %112 {offsets = [0, 0], sizes = [1, 128], strides = [1, 1]} : vector<1x256xf32> to vector<1x128xf32>
    %114 = vector.extract_strided_slice %112 {offsets = [0, 128], sizes = [1, 128], strides = [1, 1]} : vector<1x256xf32> to vector<1x128xf32>
    %115 = vector.extract_strided_slice %105 {offsets = [0, 256], sizes = [1, 128], strides = [1, 1]} : vector<1x512xf32> to vector<1x128xf32>
    %116 = arith.addf %115, %1 : vector<1x128xf32>
    %117 = vector.extract_strided_slice %105 {offsets = [0, 384], sizes = [1, 128], strides = [1, 1]} : vector<1x512xf32> to vector<1x128xf32>
    %118 = arith.addf %117, %2 : vector<1x128xf32>
    %119 = arith.mulf %113, %118 : vector<1x128xf32>
    %120 = arith.addf %116, %119 : vector<1x128xf32>
    %121 = math.tanh %120 : vector<1x128xf32>
    %cst_40 = arith.constant 1.000000e+00 : f32
    %122 = vector.broadcast %cst_40 : f32 to vector<1x128xf32>
    %123 = arith.subf %122, %114 : vector<1x128xf32>
    %124 = arith.mulf %123, %121 : vector<1x128xf32>
    %125 = arith.mulf %114, %95 : vector<1x128xf32>
    %126 = arith.addf %124, %125 : vector<1x128xf32>
    %c3_41 = arith.constant 3 : index
    %c0_42 = arith.constant 0 : index
    %127 = vector.load %arg12[%c3_41, %c0_42] : memref<8x128xf32, #tpu.memory_space<vmem>>, vector<1x128xf32>
    tpu.vector_store %arg12[%c3_41, %c0_42], %126 {strides = array<i32>} : memref<8x128xf32, #tpu.memory_space<vmem>>, vector<1x128xf32>,
    %c4 = arith.constant 4 : index
    %128 = memref.load %arg1[%c4] : memref<8xi32, #tpu.memory_space<smem>>
    %129 = arith.index_cast %128 : i32 to index
    %c0_43 = arith.constant 0 : index
    %130 = vector.load %arg2[%129, %c0_43] : memref<256x128xf32, #tpu.memory_space<vmem>>, vector<1x128xf32>
    %cst_44 = arith.constant 0.000000e+00 : f32
    %131 = vector.broadcast %cst_44 : f32 to vector<1x128xf32>
    %132 = arith.maximumf %130, %131 : vector<1x128xf32>
    %133 = tpu.concatenate %132, %126 in 1 : vector<1x128xf32>, vector<1x128xf32> -> vector<1x256xf32>
    %134 = arith.truncf %133 : vector<1x256xf32> to vector<1x256xbf16>
    %c0_45 = arith.constant 0 : index
    %c0_46 = arith.constant 0 : index
    %135 = vector.load %arg4[%c0_45, %c0_46] : memref<256x512xbf16, #tpu.memory_space<vmem>>, vector<256x512xbf16>
    %cst_47 = arith.constant dense<0.000000e+00> : vector<1x512xf32>
    %136 = tpu.matmul %134, %135, %cst_47 {dimension_numbers = #tpu.dot_dimension_numbers<[1], [0], [0], [1], [0, 0, 1, 1], [], []>} : vector<1x256xbf16>, vector<256x512xbf16>, vector<1x512xf32> -> vector<1x512xf32>
    %137 = vector.extract_strided_slice %136 {offsets = [0, 0], sizes = [1, 256], strides = [1, 1]} : vector<1x512xf32> to vector<1x256xf32>
    %138 = arith.addf %137, %0 : vector<1x256xf32>
    %139 = arith.negf %138 : vector<1x256xf32>
    %140 = math.exp %139 : vector<1x256xf32>
    %cst_48 = arith.constant 1.000000e+00 : f32
    %141 = vector.broadcast %cst_48 : f32 to vector<1x256xf32>
    %142 = arith.addf %141, %140 : vector<1x256xf32>
    %143 = arith.divf %141, %142 : vector<1x256xf32>
    %144 = vector.extract_strided_slice %143 {offsets = [0, 0], sizes = [1, 128], strides = [1, 1]} : vector<1x256xf32> to vector<1x128xf32>
    %145 = vector.extract_strided_slice %143 {offsets = [0, 128], sizes = [1, 128], strides = [1, 1]} : vector<1x256xf32> to vector<1x128xf32>
    %146 = vector.extract_strided_slice %136 {offsets = [0, 256], sizes = [1, 128], strides = [1, 1]} : vector<1x512xf32> to vector<1x128xf32>
    %147 = arith.addf %146, %1 : vector<1x128xf32>
    %148 = vector.extract_strided_slice %136 {offsets = [0, 384], sizes = [1, 128], strides = [1, 1]} : vector<1x512xf32> to vector<1x128xf32>
    %149 = arith.addf %148, %2 : vector<1x128xf32>
    %150 = arith.mulf %144, %149 : vector<1x128xf32>
    %151 = arith.addf %147, %150 : vector<1x128xf32>
    %152 = math.tanh %151 : vector<1x128xf32>
    %cst_49 = arith.constant 1.000000e+00 : f32
    %153 = vector.broadcast %cst_49 : f32 to vector<1x128xf32>
    %154 = arith.subf %153, %145 : vector<1x128xf32>
    %155 = arith.mulf %154, %152 : vector<1x128xf32>
    %156 = arith.mulf %145, %126 : vector<1x128xf32>
    %157 = arith.addf %155, %156 : vector<1x128xf32>
    %c4_50 = arith.constant 4 : index
    %c0_51 = arith.constant 0 : index
    %158 = vector.load %arg12[%c4_50, %c0_51] : memref<8x128xf32, #tpu.memory_space<vmem>>, vector<1x128xf32>
    tpu.vector_store %arg12[%c4_50, %c0_51], %157 {strides = array<i32>} : memref<8x128xf32, #tpu.memory_space<vmem>>, vector<1x128xf32>,
    %c5 = arith.constant 5 : index
    %159 = memref.load %arg1[%c5] : memref<8xi32, #tpu.memory_space<smem>>
    %160 = arith.index_cast %159 : i32 to index
    %c0_52 = arith.constant 0 : index
    %161 = vector.load %arg2[%160, %c0_52] : memref<256x128xf32, #tpu.memory_space<vmem>>, vector<1x128xf32>
    %cst_53 = arith.constant 0.000000e+00 : f32
    %162 = vector.broadcast %cst_53 : f32 to vector<1x128xf32>
    %163 = arith.maximumf %161, %162 : vector<1x128xf32>
    %164 = tpu.concatenate %163, %157 in 1 : vector<1x128xf32>, vector<1x128xf32> -> vector<1x256xf32>
    %165 = arith.truncf %164 : vector<1x256xf32> to vector<1x256xbf16>
    %c0_54 = arith.constant 0 : index
    %c0_55 = arith.constant 0 : index
    %166 = vector.load %arg4[%c0_54, %c0_55] : memref<256x512xbf16, #tpu.memory_space<vmem>>, vector<256x512xbf16>
    %cst_56 = arith.constant dense<0.000000e+00> : vector<1x512xf32>
    %167 = tpu.matmul %165, %166, %cst_56 {dimension_numbers = #tpu.dot_dimension_numbers<[1], [0], [0], [1], [0, 0, 1, 1], [], []>} : vector<1x256xbf16>, vector<256x512xbf16>, vector<1x512xf32> -> vector<1x512xf32>
    %168 = vector.extract_strided_slice %167 {offsets = [0, 0], sizes = [1, 256], strides = [1, 1]} : vector<1x512xf32> to vector<1x256xf32>
    %169 = arith.addf %168, %0 : vector<1x256xf32>
    %170 = arith.negf %169 : vector<1x256xf32>
    %171 = math.exp %170 : vector<1x256xf32>
    %cst_57 = arith.constant 1.000000e+00 : f32
    %172 = vector.broadcast %cst_57 : f32 to vector<1x256xf32>
    %173 = arith.addf %172, %171 : vector<1x256xf32>
    %174 = arith.divf %172, %173 : vector<1x256xf32>
    %175 = vector.extract_strided_slice %174 {offsets = [0, 0], sizes = [1, 128], strides = [1, 1]} : vector<1x256xf32> to vector<1x128xf32>
    %176 = vector.extract_strided_slice %174 {offsets = [0, 128], sizes = [1, 128], strides = [1, 1]} : vector<1x256xf32> to vector<1x128xf32>
    %177 = vector.extract_strided_slice %167 {offsets = [0, 256], sizes = [1, 128], strides = [1, 1]} : vector<1x512xf32> to vector<1x128xf32>
    %178 = arith.addf %177, %1 : vector<1x128xf32>
    %179 = vector.extract_strided_slice %167 {offsets = [0, 384], sizes = [1, 128], strides = [1, 1]} : vector<1x512xf32> to vector<1x128xf32>
    %180 = arith.addf %179, %2 : vector<1x128xf32>
    %181 = arith.mulf %175, %180 : vector<1x128xf32>
    %182 = arith.addf %178, %181 : vector<1x128xf32>
    %183 = math.tanh %182 : vector<1x128xf32>
    %cst_58 = arith.constant 1.000000e+00 : f32
    %184 = vector.broadcast %cst_58 : f32 to vector<1x128xf32>
    %185 = arith.subf %184, %176 : vector<1x128xf32>
    %186 = arith.mulf %185, %183 : vector<1x128xf32>
    %187 = arith.mulf %176, %157 : vector<1x128xf32>
    %188 = arith.addf %186, %187 : vector<1x128xf32>
    %c5_59 = arith.constant 5 : index
    %c0_60 = arith.constant 0 : index
    %189 = vector.load %arg12[%c5_59, %c0_60] : memref<8x128xf32, #tpu.memory_space<vmem>>, vector<1x128xf32>
    tpu.vector_store %arg12[%c5_59, %c0_60], %188 {strides = array<i32>} : memref<8x128xf32, #tpu.memory_space<vmem>>, vector<1x128xf32>,
    %c6 = arith.constant 6 : index
    %190 = memref.load %arg1[%c6] : memref<8xi32, #tpu.memory_space<smem>>
    %191 = arith.index_cast %190 : i32 to index
    %c0_61 = arith.constant 0 : index
    %192 = vector.load %arg2[%191, %c0_61] : memref<256x128xf32, #tpu.memory_space<vmem>>, vector<1x128xf32>
    %cst_62 = arith.constant 0.000000e+00 : f32
    %193 = vector.broadcast %cst_62 : f32 to vector<1x128xf32>
    %194 = arith.maximumf %192, %193 : vector<1x128xf32>
    %195 = tpu.concatenate %194, %188 in 1 : vector<1x128xf32>, vector<1x128xf32> -> vector<1x256xf32>
    %196 = arith.truncf %195 : vector<1x256xf32> to vector<1x256xbf16>
    %c0_63 = arith.constant 0 : index
    %c0_64 = arith.constant 0 : index
    %197 = vector.load %arg4[%c0_63, %c0_64] : memref<256x512xbf16, #tpu.memory_space<vmem>>, vector<256x512xbf16>
    %cst_65 = arith.constant dense<0.000000e+00> : vector<1x512xf32>
    %198 = tpu.matmul %196, %197, %cst_65 {dimension_numbers = #tpu.dot_dimension_numbers<[1], [0], [0], [1], [0, 0, 1, 1], [], []>} : vector<1x256xbf16>, vector<256x512xbf16>, vector<1x512xf32> -> vector<1x512xf32>
    %199 = vector.extract_strided_slice %198 {offsets = [0, 0], sizes = [1, 256], strides = [1, 1]} : vector<1x512xf32> to vector<1x256xf32>
    %200 = arith.addf %199, %0 : vector<1x256xf32>
    %201 = arith.negf %200 : vector<1x256xf32>
    %202 = math.exp %201 : vector<1x256xf32>
    %cst_66 = arith.constant 1.000000e+00 : f32
    %203 = vector.broadcast %cst_66 : f32 to vector<1x256xf32>
    %204 = arith.addf %203, %202 : vector<1x256xf32>
    %205 = arith.divf %203, %204 : vector<1x256xf32>
    %206 = vector.extract_strided_slice %205 {offsets = [0, 0], sizes = [1, 128], strides = [1, 1]} : vector<1x256xf32> to vector<1x128xf32>
    %207 = vector.extract_strided_slice %205 {offsets = [0, 128], sizes = [1, 128], strides = [1, 1]} : vector<1x256xf32> to vector<1x128xf32>
    %208 = vector.extract_strided_slice %198 {offsets = [0, 256], sizes = [1, 128], strides = [1, 1]} : vector<1x512xf32> to vector<1x128xf32>
    %209 = arith.addf %208, %1 : vector<1x128xf32>
    %210 = vector.extract_strided_slice %198 {offsets = [0, 384], sizes = [1, 128], strides = [1, 1]} : vector<1x512xf32> to vector<1x128xf32>
    %211 = arith.addf %210, %2 : vector<1x128xf32>
    %212 = arith.mulf %206, %211 : vector<1x128xf32>
    %213 = arith.addf %209, %212 : vector<1x128xf32>
    %214 = math.tanh %213 : vector<1x128xf32>
    %cst_67 = arith.constant 1.000000e+00 : f32
    %215 = vector.broadcast %cst_67 : f32 to vector<1x128xf32>
    %216 = arith.subf %215, %207 : vector<1x128xf32>
    %217 = arith.mulf %216, %214 : vector<1x128xf32>
    %218 = arith.mulf %207, %188 : vector<1x128xf32>
    %219 = arith.addf %217, %218 : vector<1x128xf32>
    %c6_68 = arith.constant 6 : index
    %c0_69 = arith.constant 0 : index
    %220 = vector.load %arg12[%c6_68, %c0_69] : memref<8x128xf32, #tpu.memory_space<vmem>>, vector<1x128xf32>
    tpu.vector_store %arg12[%c6_68, %c0_69], %219 {strides = array<i32>} : memref<8x128xf32, #tpu.memory_space<vmem>>, vector<1x128xf32>,
    %c7 = arith.constant 7 : index
    %221 = memref.load %arg1[%c7] : memref<8xi32, #tpu.memory_space<smem>>
    %222 = arith.index_cast %221 : i32 to index
    %c0_70 = arith.constant 0 : index
    %223 = vector.load %arg2[%222, %c0_70] : memref<256x128xf32, #tpu.memory_space<vmem>>, vector<1x128xf32>
    %cst_71 = arith.constant 0.000000e+00 : f32
    %224 = vector.broadcast %cst_71 : f32 to vector<1x128xf32>
    %225 = arith.maximumf %223, %224 : vector<1x128xf32>
    %226 = tpu.concatenate %225, %219 in 1 : vector<1x128xf32>, vector<1x128xf32> -> vector<1x256xf32>
    %227 = arith.truncf %226 : vector<1x256xf32> to vector<1x256xbf16>
    %c0_72 = arith.constant 0 : index
    %c0_73 = arith.constant 0 : index
    %228 = vector.load %arg4[%c0_72, %c0_73] : memref<256x512xbf16, #tpu.memory_space<vmem>>, vector<256x512xbf16>
    %cst_74 = arith.constant dense<0.000000e+00> : vector<1x512xf32>
    %229 = tpu.matmul %227, %228, %cst_74 {dimension_numbers = #tpu.dot_dimension_numbers<[1], [0], [0], [1], [0, 0, 1, 1], [], []>} : vector<1x256xbf16>, vector<256x512xbf16>, vector<1x512xf32> -> vector<1x512xf32>
    %230 = vector.extract_strided_slice %229 {offsets = [0, 0], sizes = [1, 256], strides = [1, 1]} : vector<1x512xf32> to vector<1x256xf32>
    %231 = arith.addf %230, %0 : vector<1x256xf32>
    %232 = arith.negf %231 : vector<1x256xf32>
    %233 = math.exp %232 : vector<1x256xf32>
    %cst_75 = arith.constant 1.000000e+00 : f32
    %234 = vector.broadcast %cst_75 : f32 to vector<1x256xf32>
    %235 = arith.addf %234, %233 : vector<1x256xf32>
    %236 = arith.divf %234, %235 : vector<1x256xf32>
    %237 = vector.extract_strided_slice %236 {offsets = [0, 0], sizes = [1, 128], strides = [1, 1]} : vector<1x256xf32> to vector<1x128xf32>
    %238 = vector.extract_strided_slice %236 {offsets = [0, 128], sizes = [1, 128], strides = [1, 1]} : vector<1x256xf32> to vector<1x128xf32>
    %239 = vector.extract_strided_slice %229 {offsets = [0, 256], sizes = [1, 128], strides = [1, 1]} : vector<1x512xf32> to vector<1x128xf32>
    %240 = arith.addf %239, %1 : vector<1x128xf32>
    %241 = vector.extract_strided_slice %229 {offsets = [0, 384], sizes = [1, 128], strides = [1, 1]} : vector<1x512xf32> to vector<1x128xf32>
    %242 = arith.addf %241, %2 : vector<1x128xf32>
    %243 = arith.mulf %237, %242 : vector<1x128xf32>
    %244 = arith.addf %240, %243 : vector<1x128xf32>
    %245 = math.tanh %244 : vector<1x128xf32>
    %cst_76 = arith.constant 1.000000e+00 : f32
    %246 = vector.broadcast %cst_76 : f32 to vector<1x128xf32>
    %247 = arith.subf %246, %238 : vector<1x128xf32>
    %248 = arith.mulf %247, %245 : vector<1x128xf32>
    %249 = arith.mulf %238, %219 : vector<1x128xf32>
    %250 = arith.addf %248, %249 : vector<1x128xf32>
    %c7_77 = arith.constant 7 : index
    %c0_78 = arith.constant 0 : index
    %251 = vector.load %arg12[%c7_77, %c0_78] : memref<8x128xf32, #tpu.memory_space<vmem>>, vector<1x128xf32>
    tpu.vector_store %arg12[%c7_77, %c0_78], %250 {strides = array<i32>} : memref<8x128xf32, #tpu.memory_space<vmem>>, vector<1x128xf32>,
    %c0_79 = arith.constant 0 : index
    %c0_80 = arith.constant 0 : index
    %252 = vector.load %arg11[%c0_79, %c0_80] : memref<1x128xf32, #tpu.memory_space<vmem>>, vector<1x128xf32>
    tpu.vector_store %arg11[%c0_79, %c0_80], %250 {strides = array<i32>} : memref<1x128xf32, #tpu.memory_space<vmem>>, vector<1x128xf32>,
    %c0_81 = arith.constant 0 : index
    %c0_82 = arith.constant 0 : index
    %253 = vector.load %arg12[%c0_81, %c0_82] : memref<8x128xf32, #tpu.memory_space<vmem>>, vector<8x128xf32>
    %254 = arith.truncf %253 : vector<8x128xf32> to vector<8x128xbf16>
    %c0_83 = arith.constant 0 : index
    %c0_84 = arith.constant 0 : index
    %255 = vector.load %arg8[%c0_83, %c0_84] : memref<128x256xbf16, #tpu.memory_space<vmem>>, vector<128x256xbf16>
    %cst_85 = arith.constant dense<0.000000e+00> : vector<8x256xf32>
    %256 = tpu.matmul %254, %255, %cst_85 {dimension_numbers = #tpu.dot_dimension_numbers<[1], [0], [0], [1], [0, 0, 1, 1], [], []>} : vector<8x128xbf16>, vector<128x256xbf16>, vector<8x256xf32> -> vector<8x256xf32>
    %c0_86 = arith.constant 0 : index
    %c0_87 = arith.constant 0 : index
    %257 = vector.load %arg9[%c0_86, %c0_87] : memref<1x256xf32, #tpu.memory_space<vmem>>, vector<1x256xf32>
    %258 = vector.broadcast %257 : vector<1x256xf32> to vector<8x256xf32>
    %259 = arith.addf %256, %258 : vector<8x256xf32>
    %cst_88 = arith.constant dense<0xFF800000> : vector<8xf32>
    %260 = vector.multi_reduction <maximumf>, %259, %cst_88 [1] : vector<8x256xf32> to vector<8xf32>
    %261 = vector.shape_cast %260 : vector<8xf32> to vector<8x1xf32>
    %262 = vector.broadcast %261 : vector<8x1xf32> to vector<8x256xf32>
    %263 = arith.subf %259, %262 : vector<8x256xf32>
    %264 = math.exp %263 : vector<8x256xf32>
    %cst_89 = arith.constant dense<0.000000e+00> : vector<8xf32>
    %265 = vector.multi_reduction <add>, %264, %cst_89 [1] : vector<8x256xf32> to vector<8xf32>
    %266 = vector.shape_cast %265 : vector<8xf32> to vector<8x1xf32>
    %267 = math.log %266 : vector<8x1xf32>
    %268 = vector.broadcast %267 : vector<8x1xf32> to vector<8x256xf32>
    %269 = arith.subf %263, %268 : vector<8x256xf32>
    %c0_90 = arith.constant 0 : index
    %c0_91 = arith.constant 0 : index
    %270 = vector.load %arg10[%c0_90, %c0_91] : memref<8x256xf32, #tpu.memory_space<vmem>>, vector<8x256xf32>
    tpu.vector_store %arg10[%c0_90, %c0_91], %269 {strides = array<i32>} : memref<8x256xf32, #tpu.memory_space<vmem>>, vector<8x256xf32>,
    return
  }
  func.func @transform_0(%arg0: i32, %arg1: memref<8xi32, #tpu.memory_space<smem>>) -> (i32, i32) {
    %c0_i32 = arith.constant 0 : i32
    %c0_i32_0 = arith.constant 0 : i32
    %c0_i32_1 = arith.constant 0 : i32
    return %c0_i32, %c0_i32_0 : i32, i32
  }
  func.func @transform_1(%arg0: i32, %arg1: memref<8xi32, #tpu.memory_space<smem>>) -> (i32, i32) {
    %c0_i32 = arith.constant 0 : i32
    %c0_i32_0 = arith.constant 0 : i32
    %c0_i32_1 = arith.constant 0 : i32
    return %c0_i32, %c0_i32_0 : i32, i32
  }
  func.func @transform_2(%arg0: i32, %arg1: memref<8xi32, #tpu.memory_space<smem>>) -> (i32, i32) {
    %c0_i32 = arith.constant 0 : i32
    %c0_i32_0 = arith.constant 0 : i32
    %c0_i32_1 = arith.constant 0 : i32
    return %c0_i32, %c0_i32_0 : i32, i32
  }
  func.func @transform_3(%arg0: i32, %arg1: memref<8xi32, #tpu.memory_space<smem>>) -> (i32, i32) {
    %c0_i32 = arith.constant 0 : i32
    %c0_i32_0 = arith.constant 0 : i32
    %c0_i32_1 = arith.constant 0 : i32
    return %c0_i32, %c0_i32_0 : i32, i32
  }
  func.func @transform_4(%arg0: i32, %arg1: memref<8xi32, #tpu.memory_space<smem>>) -> (i32, i32) {
    %c0_i32 = arith.constant 0 : i32
    %c0_i32_0 = arith.constant 0 : i32
    %c0_i32_1 = arith.constant 0 : i32
    return %c0_i32, %c0_i32_0 : i32, i32
  }
  func.func @transform_5(%arg0: i32, %arg1: memref<8xi32, #tpu.memory_space<smem>>) -> (i32, i32) {
    %c0_i32 = arith.constant 0 : i32
    %c0_i32_0 = arith.constant 0 : i32
    %c0_i32_1 = arith.constant 0 : i32
    return %c0_i32, %c0_i32_0 : i32, i32
  }
  func.func @transform_6(%arg0: i32, %arg1: memref<8xi32, #tpu.memory_space<smem>>) -> (i32, i32) {
    %c0_i32 = arith.constant 0 : i32
    %c0_i32_0 = arith.constant 0 : i32
    %c0_i32_1 = arith.constant 0 : i32
    return %c0_i32, %c0_i32_0 : i32, i32
  }
  func.func @transform_7(%arg0: i32, %arg1: memref<8xi32, #tpu.memory_space<smem>>) -> (i32, i32) {
    %c0_i32 = arith.constant 0 : i32
    %c0_i32_0 = arith.constant 0 : i32
    %c0_i32_1 = arith.constant 0 : i32
    return %c0_i32, %c0_i32_0 : i32, i32
  }
  func.func @transform_8(%arg0: i32, %arg1: memref<8xi32, #tpu.memory_space<smem>>) -> (i32, i32) {
    %c0_i32 = arith.constant 0 : i32
    %c0_i32_0 = arith.constant 0 : i32
    %c0_i32_1 = arith.constant 0 : i32
    return %c0_i32, %c0_i32_0 : i32, i32
  }
  func.func @transform_9(%arg0: i32, %arg1: memref<8xi32, #tpu.memory_space<smem>>) -> (i32, i32) {
    %c0_i32 = arith.constant 0 : i32
    %c0_i32_0 = arith.constant 0 : i32
    %c0_i32_1 = arith.constant 0 : i32
    return %c0_i32, %c0_i32_0 : i32, i32
  }
}

</mosaic_0001>

<bundles_post_ra>
// kernel: decoder_rnn_decode.1
= control target key start
LH: loop header
LB: loop body
LE: loop exit
PB: predicated region body
PF: predicated region fallthrough
CT: control target
= control target key end

     0   :  { %s7001_s0 = inlined_call_operand.vmem [shape: s32[8], index: 0, kind: input, shape index: {}]   ;;  %s7002_s1 = inlined_call_operand.vmem [shape: f32[256,128], index: 1, kind: input, shape index: {}]   ;;  %s7003_s2 = inlined_call_operand.vmem [shape: f32[1,128], index: 2, kind: input, shape index: {}]   ;;  %s7004_s3 = inlined_call_operand.vmem [shape: bf16[256,512], index: 3, kind: input, shape index: {}]   ;;  %s7005_s4 = inlined_call_operand.vmem [shape: f32[1,256], index: 4, kind: input, shape index: {}]   ;;  %s7006_s5 = inlined_call_operand.vmem [shape: f32[1,128], index: 5, kind: input, shape index: {}]   ;;  %s7007_s6 = inlined_call_operand.vmem [shape: f32[1,128], index: 6, kind: input, shape index: {}]   ;;  %s7008_s7 = inlined_call_operand.vmem [shape: bf16[128,256], index: 7, kind: input, shape index: {}]   ;;  %s7009_s8 = inlined_call_operand.vmem [shape: f32[1,256], index: 8, kind: input, shape index: {}]   ;;  %s7010_s9 = inlined_call_operand.hbm [shape: f32[8,256], index: 9, kind: output, shape index: {0}]   ;;  %s7011_s10 = inlined_call_operand.hbm [shape: f32[1,128], index: 10, kind: output, shape index: {1}]  }
   0x1   :  { %s16_s15 = sshll.u32 %s7001_s0, 4  ;;  %s17_s15 = int_to_ptr.vmem [resolvable:$true] %s16_s15 }
   0x2   :  { %s5185_s16 = scalar_lea.vmem %s17_s15, 16  ;;  %p5190_p1 = scmp.lt.s32.totalorder %s17_s15, %s17_s15 }
   0x3   :  { %p5186_p0 = scmp.ne.s32.totalorder %s17_s15, %s5185_s16  ;;  %p5191_p2 = scmp.lt.s32.totalorder %s5185_s16, %s5185_s16 }
   0x5   :  { %p5192_p3 = por %p5191_p2, %p5190_p1 }
   0x7   :  { %p5193_p4 = pnand %p5192_p3, %p5186_p0 }
   0x9   :  { %5196 = shalt.err (!%p5193_p4)  }
   0xa   :  { %s5247_s17 = smov [#allocation4]  }
   0xb   :  { %19 = dma.vmem_to_smem %s17_s15, 16, %s5247_s17, [#allocation3] }
   0xc   :  { %5241 = dma.done.wait [#allocation3], 16 }
   0xd   :  { %5242 = vsyncadd [#allocation3], 4294967280 }
   0xe   :  { %21 = sfence }
   0xf   :  { %22 = vsyncpa [#allocation6], 0  ;;  %v5312_v0 = vld [vmem:[%s7004_s3 + $0x4] ss:$16 sps:$4 sm:$0xff]   ;;  %v5317_v1 = vld [vmem:[%s7004_s3] ss:$16 sps:$4 sm:$0xff]  }
  0x10   :  { %435 = vmatprep.subr.bf16.mxu0 %v5312_v0  ;;  %v5323_v2 = vld [vmem:[%s7004_s3 + $0x24] ss:$16 sps:$4 sm:$0xff]   ;;  %v5329_v3 = vld [vmem:[%s7004_s3 + $0x20] ss:$16 sps:$4 sm:$0xff]   ;;  %v5352_v7 = vld [vmem:[%s7004_s3 + $0xc] ss:$16 sps:$4 sm:$0xff]  }
  0x11   :  { %436 = vmatpush1.bf16.msra.mxu0 %v5317_v1  ;;  %v5335_v4 = vld [vmem:[%s7004_s3 + $0x44] ss:$16 sps:$4 sm:$0xff]   ;;  %v5341_v5 = vld [vmem:[%s7004_s3 + $0x40] ss:$16 sps:$4 sm:$0xff]   ;;  %v5357_v8 = vld [vmem:[%s7004_s3 + $0x8] ss:$16 sps:$4 sm:$0xff]   ;;  %476 = vmatprep.subr.bf16.mxu1 %v5352_v7 }
  0x12   :  { %437 = vmatprep.subr.bf16.mxu0 %v5323_v2  ;;  %v5346_v6 = vld [vmem:[%s7004_s3 + $0x64] ss:$16 sps:$4 sm:$0xff]   ;;  %v5362_v9 = vld [vmem:[%s7004_s3 + $0x60] ss:$16 sps:$4 sm:$0xff]   ;;  %477 = vmatpush1.bf16.msra.mxu1 %v5357_v8  ;;  %v5370_v10 = vld [vmem:[%s7004_s3 + $0x2c] ss:$16 sps:$4 sm:$0xff]  }
  0x13   :  { %v5375_v11 = vld [vmem:[%s7004_s3 + $0x28] ss:$16 sps:$4 sm:$0xff]   ;;  %v5381_v12 = vld [vmem:[%s7004_s3 + $0x84] ss:$16 sps:$4 sm:$0xff]   ;;  %478 = vmatprep.subr.bf16.mxu1 %v5370_v10  ;;  %v5387_v13 = vld [vmem:[%s7004_s3 + $0x80] ss:$16 sps:$4 sm:$0xff]  }
  0x14   :  { %v5392_v14 = vld [vmem:[%s7004_s3 + $0x4c] ss:$16 sps:$4 sm:$0xff]   ;;  %v5398_v15 = vld [vmem:[%s7004_s3 + $0xa4] ss:$16 sps:$4 sm:$0xff]   ;;  %v5404_v16 = vld [vmem:[%s7004_s3 + $0x48] ss:$16 sps:$4 sm:$0xff]  }
  0x15   :  { %438 = vmatpush1.bf16.msra.mxu0 %v5329_v3  ;;  %v5411_v17 = vld [vmem:[%s7004_s3 + $0x6c] ss:$16 sps:$4 sm:$0xff]   ;;  %v5416_v18 = vld [vmem:[%s7004_s3 + $0xa0] ss:$16 sps:$4 sm:$0xff]   ;;  %v5422_v19 = vld [vmem:[%s7004_s3 + $0xc4] ss:$16 sps:$4 sm:$0xff]  }
  0x16   :  { %439 = vmatprep.subr.bf16.mxu0 %v5335_v4  ;;  %479 = vmatpush1.bf16.msra.mxu1 %v5375_v11  ;;  %v5428_v20 = vld [vmem:[%s7004_s3 + $0x68] ss:$16 sps:$4 sm:$0xff]   ;;  %v5435_v21 = vld [vmem:[%s7004_s3 + $0x8c] ss:$16 sps:$4 sm:$0xff]   ;;  %v5440_v22 = vld [vmem:[%s7004_s3 + $0xc0] ss:$16 sps:$4 sm:$0xff]  }
  0x17   :  { %480 = vmatprep.subr.bf16.mxu1 %v5392_v14  ;;  %v5446_v23 = vld [vmem:[%s7004_s3 + $0xe4] ss:$16 sps:$4 sm:$0xff]   ;;  %v5452_v24 = vld [vmem:[%s7004_s3 + $0x88] ss:$16 sps:$4 sm:$0xff]   ;;  %v5459_v25 = vld [vmem:[%s7004_s3 + $0xac] ss:$16 sps:$4 sm:$0xff]  }
  0x18   :  { %v5464_v26 = vld [vmem:[%s7004_s3 + $0xe0] ss:$16 sps:$4 sm:$0xff]   ;;  %v5470_v27 = vld [vmem:[%s7004_s3 + $0x104] ss:$16 sps:$4 sm:$0xff]   ;;  %v5476_v28 = vld [vmem:[%s7004_s3 + $0xa8] ss:$16 sps:$4 sm:$0xff]  }
  0x19   :  { %440 = vmatpush1.bf16.msra.mxu0 %v5341_v5  ;;  %v5483_v29 = vld [vmem:[%s7004_s3 + $0xcc] ss:$16 sps:$4 sm:$0xff]   ;;  %v5488_v30 = vld [vmem:[%s7004_s3 + $0x100] ss:$16 sps:$4 sm:$0xff]   ;;  %v5494_v31 = vld [vmem:[%s7004_s3 + $0x124] ss:$16 sps:$4 sm:$0xff]  }
  0x1a   :  { %441 = vmatprep.subr.bf16.mxu0 %v5346_v6  ;;  %481 = vmatpush1.bf16.msra.mxu1 %v5404_v16  ;;  %v5500_v32 = vld [vmem:[%s7004_s3 + $0xc8] ss:$16 sps:$4 sm:$0xff]   ;;  %v5507_v33 = vld [vmem:[%s7004_s3 + $0xec] ss:$16 sps:$4 sm:$0xff]   ;;  %v5512_v34 = vld [vmem:[%s7004_s3 + $0x120] ss:$16 sps:$4 sm:$0xff]  }
  0x1b   :  { %482 = vmatprep.subr.bf16.mxu1 %v5411_v17  ;;  %v5519_v35 = vld [vmem:[%s7004_s3 + $0xe8] ss:$16 sps:$4 sm:$0xff]   ;;  %v5524_v36 = vld [vmem:[%s7003_s2] sm:$0x1]  ;;  %v5530_v37 = vld [vmem:[%s7004_s3 + $0x144] ss:$16 sps:$4 sm:$0xff]  }
  0x1c   :  { %7099 = vst [vmem:[#allocation12_spill] sm:$0xff] %v5524_v36  ;;  %v5536_v38 = vld [vmem:[%s7004_s3 + $0x10c] ss:$16 sps:$4 sm:$0xff]   ;;  %v50_v39 = vpack.c.bf16 %v5524_v36, %v5524_v36  ;;  %v5543_v40 = vld [vmem:[%s7004_s3 + $0x140] ss:$16 sps:$4 sm:$0xff]   ;;  %s45_s22 = sld [smem:[#allocation4]] }
  0x1d   :  { %442 = vmatpush1.bf16.msra.mxu0 %v5362_v9  ;;  %v5550_v41 = vld [vmem:[%s7004_s3 + $0x108] ss:$16 sps:$4 sm:$0xff]   ;;  %v5556_v42 = vld [vmem:[%s7004_s3 + $0x164] ss:$16 sps:$4 sm:$0xff]   ;;  %v5562_v43 = vld [vmem:[%s7004_s3 + $0x12c] ss:$16 sps:$4 sm:$0xff]  }
  0x1e   :  { %443 = vmatprep.subr.bf16.mxu0 %v5381_v12  ;;  %483 = vmatpush1.bf16.msra.mxu1 %v5428_v20  ;;  %v5567_v44 = vld [vmem:[%s7004_s3 + $0x160] ss:$16 sps:$4 sm:$0xff]   ;;  %v5572_v45 = vld [vmem:[%s7004_s3 + $0x184] ss:$16 sps:$4 sm:$0xff]   ;;  %v5579_v46 = vld [vmem:[%s7004_s3 + $0x128] ss:$16 sps:$4 sm:$0xff]  }
  0x1f   :  { %484 = vmatprep.subr.bf16.mxu1 %v5435_v21  ;;  %467 = vmatprep.mubr.bf16.mxu0 %v50_v39  ;;  %7100 = vst [vmem:[#allocation13_spill] sm:$0xff] %v5572_v45  ;;  %v5584_v47 = vld [vmem:[%s7004_s3 + $0x14c] ss:$16 sps:$4 sm:$0xff]   ;;  %v5591_v48 = vld [vmem:[%s7004_s3 + $0x180] ss:$16 sps:$4 sm:$0xff]  }
  0x20   :  { %508 = vmatprep.mubr.bf16.mxu1 %v50_v39  ;;  %7101 = vst [vmem:[#allocation14_spill] sm:$0xff] %v5591_v48  ;;  %v5596_v49 = vld [vmem:[%s7004_s3 + $0x148] ss:$16 sps:$4 sm:$0xff]   ;;  %v5601_v50 = vld [vmem:[%s7004_s3 + $0x1a4] ss:$16 sps:$4 sm:$0xff]  }
  0x21   :  { %444 = vmatpush1.bf16.msra.mxu0 %v5387_v13  ;;  %7102 = vst [vmem:[#allocation15_spill] sm:$0xff] %v5601_v50  ;;  %v5606_v51 = vld [vmem:[%s7004_s3 + $0x16c] ss:$16 sps:$4 sm:$0xff]   ;;  %v5615_v52 = vld [vmem:[%s7004_s3 + $0x1a0] ss:$16 sps:$4 sm:$0xff]  }
  0x22   :  { %445 = vmatprep.subr.bf16.mxu0 %v5398_v15  ;;  %485 = vmatpush1.bf16.msra.mxu1 %v5452_v24  ;;  %7103 = vst [vmem:[#allocation16_spill] sm:$0xff] %v5615_v52  ;;  %v5620_v53 = vld [vmem:[%s7004_s3 + $0x168] ss:$16 sps:$4 sm:$0xff]   ;;  %v5625_v54 = vld [vmem:[%s7004_s3 + $0x1c4] ss:$16 sps:$4 sm:$0xff]   ;;  %s46_s21 = scalar_lea.vmem %s7002_s1, %s45_s22 }
  0x23   :  { %486 = vmatprep.subr.bf16.mxu1 %v5459_v25  ;;  %7104 = vst [vmem:[#allocation17_spill] sm:$0xff] %v5620_v53  ;;  %7105 = vst [vmem:[#allocation18_spill] sm:$0xff] %v5625_v54  ;;  %v5633_v55 = vld [vmem:[%s7004_s3 + $0x18c] ss:$16 sps:$4 sm:$0xff]   ;;  %v5642_v56 = vld [vmem:[%s7004_s3 + $0x1c0] ss:$16 sps:$4 sm:$0xff]  }
  0x24   :  { %7106 = vst [vmem:[#allocation19_spill] sm:$0xff] %v5633_v55  ;;  %7107 = vst [vmem:[#allocation20_spill] sm:$0xff] %v5642_v56  ;;  %v47_v57 = vld [vmem:[%s46_s21] sm:$0x1]  ;;  %v5647_v58 = vld [vmem:[%s7004_s3 + $0x188] ss:$16 sps:$4 sm:$0xff]  }
  0x25   :  { %446 = vmatpush1.bf16.msra.mxu0 %v5416_v18  ;;  %7108 = vst [vmem:[#allocation21_spill] sm:$0xff] %v5647_v58  ;;  %v5652_v59 = vld [vmem:[%s7004_s3 + $0x1e4] ss:$16 sps:$4 sm:$0xff]   ;;  %v5657_v60 = vld [vmem:[%s7004_s3 + $0x1ac] ss:$16 sps:$4 sm:$0xff]   ;;  %v48_v63 = vmax.f32 %v47_v57, 0.0 }
  0x26   :  { %447 = vmatprep.subr.bf16.mxu0 %v5422_v19  ;;  %487 = vmatpush1.bf16.msra.mxu1 %v5476_v28  ;;  %7109 = vst [vmem:[#allocation22_spill] sm:$0xff] %v5652_v59  ;;  %7110 = vst [vmem:[#allocation23_spill] sm:$0xff] %v5657_v60  ;;  %v5666_v61 = vld [vmem:[%s7004_s3 + $0x1e0] ss:$16 sps:$4 sm:$0xff]   ;;  %v5671_v62 = vld [vmem:[%s7004_s3 + $0x1a8] ss:$16 sps:$4 sm:$0xff]  }
  0x27   :  { %488 = vmatprep.subr.bf16.mxu1 %v5483_v29  ;;  %7111 = vst [vmem:[#allocation24_spill] sm:$0xff] %v5666_v61  ;;  %7112 = vst [vmem:[#allocation25_spill] sm:$0xff] %v5671_v62  ;;  %v5676_v39 = vld [vmem:[%s7004_s3 + $0x1cc] ss:$16 sps:$4 sm:$0xff]   ;;  %v5685_v36 = vld [vmem:[%s7004_s3 + $0x1c8] ss:$16 sps:$4 sm:$0xff]  }
  0x28   :  { %7113 = vst [vmem:[#allocation26_spill] sm:$0xff] %v5676_v39  ;;  %7114 = vst [vmem:[#allocation27_spill] sm:$0xff] %v5685_v36  ;;  %v5690_v57 = vld [vmem:[%s7004_s3 + $0x1ec] ss:$16 sps:$4 sm:$0xff]  }
  0x29   :  { %448 = vmatpush1.bf16.msra.mxu0 %v5440_v22  ;;  %7115 = vst [vmem:[#allocation28_spill] sm:$0xff] %v5690_v57 }
  0x2a   :  { %449 = vmatprep.subr.bf16.mxu0 %v5446_v23  ;;  %489 = vmatpush1.bf16.msra.mxu1 %v5500_v32 }
  0x2b   :  { %490 = vmatprep.subr.bf16.mxu1 %v5507_v33 }
  0x2d   :  { %450 = vmatpush1.bf16.msra.mxu0 %v5464_v26 }
  0x2e   :  { %451 = vmatprep.subr.bf16.mxu0 %v5470_v27  ;;  %491 = vmatpush1.bf16.msra.mxu1 %v5519_v35 }
  0x2f   :  { %492 = vmatprep.subr.bf16.mxu1 %v5536_v38 }
  0x31   :  { %452 = vmatpush1.bf16.msra.mxu0 %v5488_v30 }
  0x32   :  { %453 = vmatprep.subr.bf16.mxu0 %v5494_v31  ;;  %493 = vmatpush1.bf16.msra.mxu1 %v5550_v41 }
  0x33   :  { %494 = vmatprep.subr.bf16.mxu1 %v5562_v43 }
  0x35   :  { %454 = vmatpush1.bf16.msra.mxu0 %v5512_v34 }
  0x36   :  { %455 = vmatprep.subr.bf16.mxu0 %v5530_v37  ;;  %495 = vmatpush1.bf16.msra.mxu1 %v5579_v46 }
  0x37   :  { %496 = vmatprep.subr.bf16.mxu1 %v5584_v47 }
  0x39   :  { %456 = vmatpush1.bf16.msra.mxu0 %v5543_v40 }
  0x3a   :  { %457 = vmatprep.subr.bf16.mxu0 %v5556_v42  ;;  %497 = vmatpush1.bf16.msra.mxu1 %v5596_v49 }
  0x3b   :  { %498 = vmatprep.subr.bf16.mxu1 %v5606_v51 }
  0x3d   :  { %458 = vmatpush1.bf16.msra.mxu0 %v5567_v44 }
  0x3e   :  { %459 = vmatprep.subr.bf16.mxu0 %v5572_v45  ;;  %499 = vmatpush1.bf16.msra.mxu1 %v5620_v53 }
  0x3f   :  { %500 = vmatprep.subr.bf16.mxu1 %v5633_v55  ;;  %v49_v55 = vpack.c.bf16 %v48_v63, %v48_v63 }
  0x41   :  { %460 = vmatpush1.bf16.msra.mxu0 %v5591_v48 }
  0x42   :  { %461 = vmatprep.subr.bf16.mxu0 %v5601_v50  ;;  %501 = vmatpush1.bf16.msra.mxu1 %v5647_v58 }
  0x43   :  { %502 = vmatprep.subr.bf16.mxu1 %v5657_v60  ;;  %v5699_v60 = vld [vmem:[%s7004_s3 + $0x1e8] ss:$16 sps:$4 sm:$0xff]  }
  0x44   :  { %7116 = vst [vmem:[#allocation29_spill] sm:$0xff] %v5699_v60 }
  0x45   :  { %462 = vmatpush1.bf16.msra.mxu0 %v5615_v52 }
  0x46   :  { %463 = vmatprep.subr.bf16.mxu0 %v5625_v54  ;;  %503 = vmatpush1.bf16.msra.mxu1 %v5671_v62 }
  0x47   :  { %504 = vmatprep.subr.bf16.mxu1 %v5676_v39 }
  0x49   :  { %464 = vmatpush1.bf16.msra.mxu0 %v5642_v56 }
  0x4a   :  { %465 = vmatprep.subr.bf16.mxu0 %v5652_v59  ;;  %505 = vmatpush1.bf16.msra.mxu1 %v5685_v36 }
  0x4b   :  { %506 = vmatprep.subr.bf16.mxu1 %v5690_v57 }
  0x4d   :  { %466 = vmatpush1.bf16.msra.mxu0 %v5666_v61 }
  0x4e   :  { %942 = vmatprep.subr.bf16.mxu0 %v5312_v0  ;;  %507 = vmatpush1.bf16.msra.mxu1 %v5699_v60 }
  0x4f   :  { %983 = vmatprep.subr.bf16.mxu1 %v5352_v7 }
  0x50   :  { %468 = vmatmul.mubr.bf16.vlgmr.msra.gmra.mrb[0].mxu0 %v49_v55 }
  0x51   :  { %943 = vmatpush1.bf16.msra.mxu0 %v5317_v1  ;;  %509 = vmatmul.mubr.bf16.vlgmr.msra.gmra.mrb[0].mxu1 %v49_v55 }
  0x52   :  { %944 = vmatprep.subr.bf16.mxu0 %v5323_v2  ;;  %984 = vmatpush1.bf16.msra.mxu1 %v5357_v8 }
  0x53   :  { %985 = vmatprep.subr.bf16.mxu1 %v5370_v10 }
  0x55   :  { %945 = vmatpush1.bf16.msra.mxu0 %v5329_v3 }
  0x56   :  { %946 = vmatprep.subr.bf16.mxu0 %v5335_v4  ;;  %986 = vmatpush1.bf16.msra.mxu1 %v5375_v11 }
  0x57   :  { %987 = vmatprep.subr.bf16.mxu1 %v5392_v14 }
  0x59   :  { %947 = vmatpush1.bf16.msra.mxu0 %v5341_v5 }
  0x5a   :  { %948 = vmatprep.subr.bf16.mxu0 %v5346_v6  ;;  %988 = vmatpush1.bf16.msra.mxu1 %v5404_v16 }
  0x5b   :  { %989 = vmatprep.subr.bf16.mxu1 %v5411_v17 }
  0x5d   :  { %949 = vmatpush1.bf16.msra.mxu0 %v5362_v9 }
  0x5e   :  { %950 = vmatprep.subr.bf16.mxu0 %v5381_v12  ;;  %990 = vmatpush1.bf16.msra.mxu1 %v5428_v20 }
  0x5f   :  { %991 = vmatprep.subr.bf16.mxu1 %v5435_v21 }
  0x61   :  { %951 = vmatpush1.bf16.msra.mxu0 %v5387_v13 }
  0x62   :  { %952 = vmatprep.subr.bf16.mxu0 %v5398_v15  ;;  %992 = vmatpush1.bf16.msra.mxu1 %v5452_v24 }
  0x65   :  { %953 = vmatpush1.bf16.msra.mxu0 %v5416_v18 }
  0x66   :  { %954 = vmatprep.subr.bf16.mxu0 %v5422_v19 }
  0x69   :  { %955 = vmatpush1.bf16.msra.mxu0 %v5440_v22 }
  0x6a   :  { %23 = vsyncpa [#allocation8], 0  ;;  %956 = vmatprep.subr.bf16.mxu0 %v5446_v23  ;;  %993 = vmatprep.subr.bf16.mxu1 %v5459_v25  ;;  %v7117_v55 = vld [vmem:[#allocation19_spill] sm:$0xff]  ;;  %s4296_s27 = sld [smem:[#allocation4 + $0x1]]  ;;  %s4363_s2 = sld [smem:[#allocation4 + $0x2]] }
  0x6b   :  { %994 = vmatpush1.bf16.msra.mxu1 %v5476_v28  ;;  %v7118_v63 = vld [vmem:[#allocation23_spill] sm:$0xff]  ;;  %s4430_s26 = sld [smem:[#allocation4 + $0x3]]  ;;  %s4497_s29 = sld [smem:[#allocation4 + $0x4]] }
  0x6c   :  { %995 = vmatprep.subr.bf16.mxu1 %v5483_v29  ;;  %s4564_s14 = sld [smem:[#allocation4 + $0x5]] }
  0x6d   :  { %957 = vmatpush1.bf16.msra.mxu0 %v5464_v26 }
  0x6e   :  { %958 = vmatprep.subr.bf16.mxu0 %v5470_v27 }
  0x6f   :  { %996 = vmatpush1.bf16.msra.mxu1 %v5500_v32 }
  0x70   :  { %997 = vmatprep.subr.bf16.mxu1 %v5507_v33  ;;  %s553_s30 = scalar_lea.vmem %s7002_s1, %s4296_s27  ;;  %s1049_s15 = scalar_lea.vmem %s7002_s1, %s4363_s2 }
  0x71   :  { %959 = vmatpush1.bf16.msra.mxu0 %v5488_v30  ;;  %s1545_s28 = scalar_lea.vmem %s7002_s1, %s4430_s26  ;;  %s2041_s12 = scalar_lea.vmem %s7002_s1, %s4497_s29 }
  0x72   :  { %960 = vmatprep.subr.bf16.mxu0 %v5494_v31  ;;  %s2537_s17 = scalar_lea.vmem %s7002_s1, %s4564_s14 }
  0x73   :  { %998 = vmatpush1.bf16.msra.mxu1 %v5519_v35 }
  0x74   :  { %999 = vmatprep.subr.bf16.mxu1 %v5536_v38 }
  0x75   :  { %961 = vmatpush1.bf16.msra.mxu0 %v5512_v34 }
  0x76   :  { %962 = vmatprep.subr.bf16.mxu0 %v5530_v37 }
  0x77   :  { %1000 = vmatpush1.bf16.msra.mxu1 %v5550_v41 }
  0x78   :  { %1001 = vmatprep.subr.bf16.mxu1 %v5562_v43 }
  0x79   :  { %963 = vmatpush1.bf16.msra.mxu0 %v5543_v40 }
  0x7a   :  { %964 = vmatprep.subr.bf16.mxu0 %v5556_v42 }
  0x7b   :  { %1002 = vmatpush1.bf16.msra.mxu1 %v5579_v46 }
  0x7c   :  { %1003 = vmatprep.subr.bf16.mxu1 %v5584_v47 }
  0x7d   :  { %965 = vmatpush1.bf16.msra.mxu0 %v5567_v44 }
  0x7e   :  { %966 = vmatprep.subr.bf16.mxu0 %v5572_v45 }
  0x7f   :  { %1004 = vmatpush1.bf16.msra.mxu1 %v5596_v49 }
  0x80   :  { %1005 = vmatprep.subr.bf16.mxu1 %v5606_v51 }
  0x81   :  { %967 = vmatpush1.bf16.msra.mxu0 %v5591_v48 }
  0x82   :  { %968 = vmatprep.subr.bf16.mxu0 %v5601_v50 }
  0x83   :  { %1006 = vmatpush1.bf16.msra.mxu1 %v5620_v53 }
  0x84   :  { %1007 = vmatprep.subr.bf16.mxu1 %v7117_v55 }
  0x85   :  { %969 = vmatpush1.bf16.msra.mxu0 %v5615_v52 }
  0x86   :  { %970 = vmatprep.subr.bf16.mxu0 %v5625_v54 }
  0x87   :  { %1008 = vmatpush1.bf16.msra.mxu1 %v5647_v58 }
  0x88   :  { %1009 = vmatprep.subr.bf16.mxu1 %v7118_v63 }
  0x89   :  { %971 = vmatpush1.bf16.msra.mxu0 %v5642_v56  ;;  %v518_v56 = vlaneseq }
  0x8a   :  { %972 = vmatprep.subr.bf16.mxu0 %v5652_v59 }
  0x8b   :  { %1010 = vmatpush1.bf16.msra.mxu1 %v5671_v62  ;;  %v5769_v59 = vshrl.u32 %v518_v56, 7 }
  0x8c   :  { %1011 = vmatprep.subr.bf16.mxu1 %v5676_v39 }
  0x8d   :  { %973 = vmatpush1.bf16.msra.mxu0 %v5666_v61  ;;  %7119 = vst [vmem:[#allocation30_spill] sm:$0xff] %v5769_v59  ;;  %v7030_v54 = vsub.s32 0, %v5769_v59  ;;  %v41_v61 = vld [vmem:[%s7005_s4] sm:$0x3]  ;;  %v7033_v39 = vsub.s32 1, %v5769_v59 }
  0x8e   :  { %1438 = vmatprep.subr.bf16.mxu0 %v5312_v0 }
  0x8f   :  { %1012 = vmatpush1.bf16.msra.mxu1 %v5685_v36  ;;  %v5778_v0 = vrot.slane %v41_v61, %v7030_v54 }
  0x90   :  { %1013 = vmatprep.subr.bf16.mxu1 %v5690_v57 }
  0x93   :  { %1014 = vmatpush1.bf16.msra.mxu1 %v5699_v60  ;;  %v5782_v60 = vrot.slane %v41_v61, %v7033_v39  ;;  %v7121_v39 = vld [vmem:[#allocation12_spill] sm:$0xff] }
  0x94   :  { %1479 = vmatprep.subr.bf16.mxu1 %v5352_v7 }
 0x123   :  { %v469_v57 = vpop.f32.mrb[0].mxu0 }
 0x124   :  { %v528_v7 = vadd.f32 %v5778_v0, %v469_v57  ;;  %v471_v56 = vpop.f32.mrb[1].mxu0  ;;  %v510_v58 = vpop.f32.mrb[0].mxu1  ;;  %v5789_v57 = vld [vmem:[%s7007_s6] sm:$0x1] }
 0x125   :  { %v473_v36 = vpop.f32.mrb[2].mxu0  ;;  %v529_v63 = vadd.f32 %v5782_v60, %v471_v56  ;;  %v512_v48 = vpop.f32.mrb[1].mxu1  ;;  %7120 = vst [vmem:[#allocation31_spill] sm:$0xff] %v5789_v57 }
 0x126   :  { %v4294_v62 = vmul.f32 -1.442695, %v528_v7  ;;  %v474_v52 = vpop.f32.mrb[3].mxu0  ;;  %v514_v55 = vpop.f32.mrb[2].mxu1 }
 0x127   :  { %v4295_v50 = vmul.f32 -1.442695, %v529_v63  ;;  %v515_v54 = vpop.f32.mrb[3].mxu1  ;;  %v543_v52 = vadd.f32 %v512_v48, %v5789_v57  ;;  %v554_v63 = vld [vmem:[%s553_s30] sm:$0x1]  ;;  %s4631_s30 = sld [smem:[#allocation4 + $0x6]] }
 0x128   :  { %5097 = vpow2.f32 %v4294_v62  ;;  %v5795_v62 = vld [vmem:[%s7006_s5] sm:$0x1]  ;;  %v555_v56 = vmax.f32 %v554_v63, 0.0 }
 0x129   :  { %5099 = vpow2.f32 %v4295_v50  ;;  %v542_v50 = vadd.f32 %v510_v58, %v5795_v62  ;;  %v5914_v63 = vld [vmem:[%s7004_s3 + $0x40] ss:$16 sps:$4 sm:$0xff]  }
 0x132   :  { %v5098_v45 = vpop.eup %5097 }
 0x133   :  { %v536_v53 = vadd.f32 1.0, %v5098_v45  ;;  %v5100_v61 = vpop.eup %5099 }
 0x134   :  { %v537_v36 = vadd.f32 1.0, %v5100_v61 }
 0x135   :  { %5101 = vrcp.f32 %v536_v53 }
 0x136   :  { %5103 = vrcp.f32 %v537_v36  ;;  %v556_v36 = vpack.c.bf16 %v555_v56, %v555_v56  ;;  %v5933_v56 = vld [vmem:[%s7004_s3 + $0x84] ss:$16 sps:$4 sm:$0xff]  }
 0x13f   :  { %v5102_v55 = vpop.eup %5101 }
 0x140   :  { %v544_v45 = vmul.f32 %v5102_v55, %v543_v52  ;;  %v5104_v54 = vpop.eup %5103 }
 0x141   :  { %v547_v48 = vsub.f32 1.0, %v5104_v54  ;;  %v549_v59 = vmul.f32 %v5104_v54, %v7121_v39  ;;  %v5908_v54 = vld [vmem:[%s7004_s3 + $0x44] ss:$16 sps:$4 sm:$0xff]  }
 0x142   :  { %v545_v53 = vadd.f32 %v544_v45, %v542_v50  ;;  %v5891_v45 = vld [vmem:[%s7004_s3] ss:$16 sps:$4 sm:$0xff]  }
 0x144   :  { %5105 = vtanh.f32 %v545_v53  ;;  %v5896_v53 = vld [vmem:[%s7004_s3 + $0x24] ss:$16 sps:$4 sm:$0xff]  }
 0x14e   :  { %v5106_v7 = vpop.eup %5105 }
 0x14f   :  { %v548_v61 = vmul.f32 %v5106_v7, %v547_v48  ;;  %v5920_v48 = vld [vmem:[%s7004_s3 + $0x64] ss:$16 sps:$4 sm:$0xff]   ;;  %v5926_v7 = vld [vmem:[%s7004_s3 + $0x60] ss:$16 sps:$4 sm:$0xff]  }
 0x151   :  { %v5802_v57 = vadd.f32 %v549_v59, %v548_v61  ;;  %v5938_v61 = vld [vmem:[%s7004_s3 + $0x80] ss:$16 sps:$4 sm:$0xff]  }
 0x153   :  { %551 = vst [vmem:[#allocation2] sm:$0x1] %v5802_v57  ;;  %v557_v58 = vpack.c.bf16 %v5802_v57, %v5802_v57 }
 0x155   :  { %974 = vmatprep.mubr.bf16.mxu0 %v557_v58  ;;  %1015 = vmatprep.mubr.bf16.mxu1 %v557_v58  ;;  %v5950_v58 = vld [vmem:[%s7004_s3 + $0xa0] ss:$16 sps:$4 sm:$0xff]  }
 0x156   :  { %975 = vmatmul.mubr.bf16.vlgmr.msra.gmra.mrb[4].mxu0 %v556_v36  ;;  %1016 = vmatmul.mubr.bf16.vlgmr.msra.gmra.mrb[4].mxu1 %v556_v36  ;;  %v5945_v36 = vld [vmem:[%s7004_s3 + $0xa4] ss:$16 sps:$4 sm:$0xff]  }
 0x157   :  { %1439 = vmatpush1.bf16.msra.mxu0 %v5317_v1  ;;  %1480 = vmatpush1.bf16.msra.mxu1 %v5357_v8  ;;  %v7122_v1 = vld [vmem:[#allocation17_spill] sm:$0xff]  ;;  %v7128_v8 = vld [vmem:[#allocation23_spill] sm:$0xff] }
 0x158   :  { %1440 = vmatprep.subr.bf16.mxu0 %v5323_v2  ;;  %1481 = vmatprep.subr.bf16.mxu1 %v5370_v10  ;;  %v7123_v2 = vld [vmem:[#allocation13_spill] sm:$0xff] }
 0x159   :  { %v7130_v10 = vld [vmem:[#allocation25_spill] sm:$0xff] }
 0x15b   :  { %1441 = vmatpush1.bf16.msra.mxu0 %v5329_v3  ;;  %1482 = vmatpush1.bf16.msra.mxu1 %v5375_v11  ;;  %v7124_v3 = vld [vmem:[#allocation19_spill] sm:$0xff]  ;;  %v7131_v11 = vld [vmem:[#allocation18_spill] sm:$0xff] }
 0x15c   :  { %1442 = vmatprep.subr.bf16.mxu0 %v5335_v4  ;;  %1483 = vmatprep.subr.bf16.mxu1 %v5392_v14  ;;  %v7125_v4 = vld [vmem:[#allocation14_spill] sm:$0xff]  ;;  %v7134_v14 = vld [vmem:[#allocation27_spill] sm:$0xff] }
 0x15f   :  { %1443 = vmatpush1.bf16.msra.mxu0 %v5341_v5  ;;  %1484 = vmatpush1.bf16.msra.mxu1 %v5404_v16  ;;  %v7126_v5 = vld [vmem:[#allocation21_spill] sm:$0xff]  ;;  %v7136_v16 = vld [vmem:[#allocation28_spill] sm:$0xff] }
 0x160   :  { %1444 = vmatprep.subr.bf16.mxu0 %v5346_v6  ;;  %1485 = vmatprep.subr.bf16.mxu1 %v5411_v17  ;;  %v7127_v6 = vld [vmem:[#allocation15_spill] sm:$0xff]  ;;  %v7137_v17 = vld [vmem:[#allocation24_spill] sm:$0xff] }
 0x163   :  { %1445 = vmatpush1.bf16.msra.mxu0 %v5362_v9  ;;  %1486 = vmatpush1.bf16.msra.mxu1 %v5428_v20  ;;  %v7129_v9 = vld [vmem:[#allocation16_spill] sm:$0xff] }
 0x164   :  { %1446 = vmatprep.subr.bf16.mxu0 %v5381_v12  ;;  %1487 = vmatprep.subr.bf16.mxu1 %v5435_v21  ;;  %v7132_v12 = vld [vmem:[#allocation26_spill] sm:$0xff] }
 0x167   :  { %1447 = vmatpush1.bf16.msra.mxu0 %v5387_v13  ;;  %1488 = vmatpush1.bf16.msra.mxu1 %v5452_v24  ;;  %v7133_v13 = vld [vmem:[#allocation20_spill] sm:$0xff] }
 0x168   :  { %1448 = vmatprep.subr.bf16.mxu0 %v5398_v15  ;;  %1489 = vmatprep.subr.bf16.mxu1 %v5459_v25  ;;  %v7135_v15 = vld [vmem:[#allocation22_spill] sm:$0xff] }
 0x16b   :  { %1449 = vmatpush1.bf16.msra.mxu0 %v5416_v18  ;;  %1490 = vmatpush1.bf16.msra.mxu1 %v5476_v28  ;;  %v7138_v18 = vld [vmem:[#allocation29_spill] sm:$0xff] }
 0x16c   :  { %1450 = vmatprep.subr.bf16.mxu0 %v5422_v19  ;;  %1491 = vmatprep.subr.bf16.mxu1 %v5483_v29  ;;  %v5872_v19 = vld [vmem:[%s7004_s3 + $0x4] ss:$16 sps:$4 sm:$0xff]  }
 0x16d   :  { %7139 = vst [vmem:[#allocation12_spill] sm:$0xff] %v5872_v19 }
 0x16f   :  { %1451 = vmatpush1.bf16.msra.mxu0 %v5440_v22  ;;  %1492 = vmatpush1.bf16.msra.mxu1 %v5500_v32 }
 0x170   :  { %1452 = vmatprep.subr.bf16.mxu0 %v5446_v23  ;;  %1493 = vmatprep.subr.bf16.mxu1 %v5507_v33 }
 0x173   :  { %1453 = vmatpush1.bf16.msra.mxu0 %v5464_v26  ;;  %1494 = vmatpush1.bf16.msra.mxu1 %v5519_v35 }
 0x174   :  { %1454 = vmatprep.subr.bf16.mxu0 %v5470_v27  ;;  %1495 = vmatprep.subr.bf16.mxu1 %v5536_v38 }
 0x177   :  { %1455 = vmatpush1.bf16.msra.mxu0 %v5488_v30  ;;  %1496 = vmatpush1.bf16.msra.mxu1 %v5550_v41 }
 0x178   :  { %1456 = vmatprep.subr.bf16.mxu0 %v5494_v31  ;;  %1497 = vmatprep.subr.bf16.mxu1 %v5562_v43 }
 0x17b   :  { %1457 = vmatpush1.bf16.msra.mxu0 %v5512_v34  ;;  %1498 = vmatpush1.bf16.msra.mxu1 %v5579_v46  ;;  %v1050_v46 = vld [vmem:[%s1049_s15] sm:$0x1] }
 0x17c   :  { %1458 = vmatprep.subr.bf16.mxu0 %v5530_v37  ;;  %1499 = vmatprep.subr.bf16.mxu1 %v5584_v47  ;;  %v7140_v37 = vld [vmem:[#allocation31_spill] sm:$0xff] }
 0x17f   :  { %1459 = vmatpush1.bf16.msra.mxu0 %v5543_v40  ;;  %1500 = vmatpush1.bf16.msra.mxu1 %v5596_v49 }
 0x180   :  { %1460 = vmatprep.subr.bf16.mxu0 %v5556_v42  ;;  %1501 = vmatprep.subr.bf16.mxu1 %v5606_v51  ;;  %v1051_v51 = vmax.f32 %v1050_v46, 0.0  ;;  %v6188_v46 = vld [vmem:[%s7004_s3 + $0x14c] ss:$16 sps:$4 sm:$0xff]  }
 0x182   :  { %v1052_v55 = vpack.c.bf16 %v1051_v51, %v1051_v51  ;;  %v6210_v51 = vld [vmem:[%s7004_s3 + $0x168] ss:$16 sps:$4 sm:$0xff]  }
 0x183   :  { %1461 = vmatpush1.bf16.msra.mxu0 %v5567_v44  ;;  %1502 = vmatpush1.bf16.msra.mxu1 %v7122_v1  ;;  %v5956_v1 = vld [vmem:[%s7004_s3 + $0xc] ss:$16 sps:$4 sm:$0xff]   ;;  %7152 = vst [vmem:[#allocation20_spill] sm:$0xff] %v6210_v51 }
 0x184   :  { %1462 = vmatprep.subr.bf16.mxu0 %v7123_v2  ;;  %1503 = vmatprep.subr.bf16.mxu1 %v7124_v3  ;;  %7141 = vst [vmem:[#allocation17_spill] sm:$0xff] %v5956_v1  ;;  %v5962_v2 = vld [vmem:[%s7004_s3 + $0x8] ss:$16 sps:$4 sm:$0xff]   ;;  %v5968_v3 = vld [vmem:[%s7004_s3 + $0xc4] ss:$16 sps:$4 sm:$0xff]  }
 0x187   :  { %1463 = vmatpush1.bf16.msra.mxu0 %v7125_v4  ;;  %1504 = vmatpush1.bf16.msra.mxu1 %v7126_v5  ;;  %v5974_v4 = vld [vmem:[%s7004_s3 + $0xc0] ss:$16 sps:$4 sm:$0xff]   ;;  %v5980_v5 = vld [vmem:[%s7004_s3 + $0x2c] ss:$16 sps:$4 sm:$0xff]  }
 0x188   :  { %1464 = vmatprep.subr.bf16.mxu0 %v7127_v6  ;;  %1505 = vmatprep.subr.bf16.mxu1 %v7128_v8  ;;  %v5986_v6 = vld [vmem:[%s7004_s3 + $0x28] ss:$16 sps:$4 sm:$0xff]   ;;  %v5992_v8 = vld [vmem:[%s7004_s3 + $0xe4] ss:$16 sps:$4 sm:$0xff]  }
 0x18b   :  { %1465 = vmatpush1.bf16.msra.mxu0 %v7129_v9  ;;  %1506 = vmatpush1.bf16.msra.mxu1 %v7130_v10  ;;  %v5998_v9 = vld [vmem:[%s7004_s3 + $0xe0] ss:$16 sps:$4 sm:$0xff]   ;;  %v6004_v10 = vld [vmem:[%s7004_s3 + $0x4c] ss:$16 sps:$4 sm:$0xff]  }
 0x18c   :  { %1466 = vmatprep.subr.bf16.mxu0 %v7131_v11  ;;  %1507 = vmatprep.subr.bf16.mxu1 %v7132_v12  ;;  %v6010_v11 = vld [vmem:[%s7004_s3 + $0x48] ss:$16 sps:$4 sm:$0xff]   ;;  %v6016_v12 = vld [vmem:[%s7004_s3 + $0x104] ss:$16 sps:$4 sm:$0xff]  }
 0x18f   :  { %1467 = vmatpush1.bf16.msra.mxu0 %v7133_v13  ;;  %1508 = vmatpush1.bf16.msra.mxu1 %v7134_v14  ;;  %v6022_v13 = vld [vmem:[%s7004_s3 + $0x100] ss:$16 sps:$4 sm:$0xff]   ;;  %v6028_v14 = vld [vmem:[%s7004_s3 + $0x68] ss:$16 sps:$4 sm:$0xff]  }
 0x190   :  { %1468 = vmatprep.subr.bf16.mxu0 %v7135_v15  ;;  %1509 = vmatprep.subr.bf16.mxu1 %v7136_v16  ;;  %v6033_v15 = vld [vmem:[%s7004_s3 + $0x6c] ss:$16 sps:$4 sm:$0xff]   ;;  %v6040_v16 = vld [vmem:[%s7004_s3 + $0x124] ss:$16 sps:$4 sm:$0xff]  }
 0x193   :  { %1469 = vmatpush1.bf16.msra.mxu0 %v7137_v17  ;;  %1510 = vmatpush1.bf16.msra.mxu1 %v7138_v18  ;;  %v6046_v17 = vld [vmem:[%s7004_s3 + $0x120] ss:$16 sps:$4 sm:$0xff]   ;;  %v6052_v18 = vld [vmem:[%s7004_s3 + $0x8c] ss:$16 sps:$4 sm:$0xff]  }
 0x194   :  { %1934 = vmatprep.subr.bf16.mxu0 %v5872_v19  ;;  %1975 = vmatprep.subr.bf16.mxu1 %v5956_v1 }
 0x229   :  { %v976_v20 = vpop.f32.mrb[4].mxu0  ;;  %v1017_v21 = vpop.f32.mrb[4].mxu1 }
 0x22a   :  { %v1024_v22 = vadd.f32 %v976_v20, %v5778_v0  ;;  %v978_v23 = vpop.f32.mrb[5].mxu0  ;;  %v1019_v24 = vpop.f32.mrb[5].mxu1  ;;  %v1038_v41 = vadd.f32 %v1017_v21, %v5795_v62  ;;  %v6058_v20 = vld [vmem:[%s7004_s3 + $0x88] ss:$16 sps:$4 sm:$0xff]   ;;  %v6064_v21 = vld [vmem:[%s7004_s3 + $0x144] ss:$16 sps:$4 sm:$0xff]  }
 0x22b   :  { %v980_v25 = vpop.f32.mrb[6].mxu0  ;;  %v1021_v26 = vpop.f32.mrb[6].mxu1  ;;  %v1025_v30 = vadd.f32 %v978_v23, %v5782_v60  ;;  %v1039_v38 = vadd.f32 %v1019_v24, %v7140_v37  ;;  %v6076_v23 = vld [vmem:[%s7004_s3 + $0xac] ss:$16 sps:$4 sm:$0xff]   ;;  %v6082_v24 = vld [vmem:[%s7004_s3 + $0xa8] ss:$16 sps:$4 sm:$0xff]  }
 0x22c   :  { %v4361_v27 = vmul.f32 -1.442695, %v1024_v22  ;;  %v981_v28 = vpop.f32.mrb[7].mxu0  ;;  %v1022_v29 = vpop.f32.mrb[7].mxu1  ;;  %v6070_v22 = vld [vmem:[%s7004_s3 + $0x140] ss:$16 sps:$4 sm:$0xff]  }
 0x22d   :  { %v4362_v31 = vmul.f32 -1.442695, %v1025_v30  ;;  %v6088_v25 = vld [vmem:[%s7004_s3 + $0x164] ss:$16 sps:$4 sm:$0xff]   ;;  %v6094_v26 = vld [vmem:[%s7004_s3 + $0x160] ss:$16 sps:$4 sm:$0xff]  }
 0x22e   :  { %5107 = vpow2.f32 %v4361_v27  ;;  %7142 = vst [vmem:[#allocation13_spill] sm:$0xff] %v6088_v25  ;;  %7143 = vst [vmem:[#allocation19_spill] sm:$0xff] %v6094_v26  ;;  %v6100_v27 = vld [vmem:[%s7004_s3 + $0xcc] ss:$16 sps:$4 sm:$0xff]   ;;  %v6106_v28 = vld [vmem:[%s7004_s3 + $0xc8] ss:$16 sps:$4 sm:$0xff]  }
 0x22f   :  { %5109 = vpow2.f32 %v4362_v31  ;;  %v6112_v29 = vld [vmem:[%s7004_s3 + $0x180] ss:$16 sps:$4 sm:$0xff]   ;;  %v6117_v30 = vld [vmem:[%s7004_s3 + $0x184] ss:$16 sps:$4 sm:$0xff]   ;;  %v6123_v31 = vld [vmem:[%s7004_s3 + $0xe8] ss:$16 sps:$4 sm:$0xff]  }
 0x230   :  { %7144 = vst [vmem:[#allocation14_spill] sm:$0xff] %v6112_v29  ;;  %7145 = vst [vmem:[#allocation21_spill] sm:$0xff] %v6117_v30 }
 0x238   :  { %v5108_v32 = vpop.eup %5107 }
 0x239   :  { %v1032_v33 = vadd.f32 1.0, %v5108_v32  ;;  %v5110_v34 = vpop.eup %5109  ;;  %v6128_v32 = vld [vmem:[%s7004_s3 + $0xec] ss:$16 sps:$4 sm:$0xff]  }
 0x23a   :  { %v1033_v35 = vadd.f32 1.0, %v5110_v34  ;;  %v6139_v34 = vld [vmem:[%s7004_s3 + $0x10c] ss:$16 sps:$4 sm:$0xff]  }
 0x23b   :  { %5111 = vrcp.f32 %v1032_v33  ;;  %v6133_v33 = vld [vmem:[%s7004_s3 + $0x1a4] ss:$16 sps:$4 sm:$0xff]  }
 0x23c   :  { %5113 = vrcp.f32 %v1033_v35  ;;  %7146 = vst [vmem:[#allocation15_spill] sm:$0xff] %v6133_v33  ;;  %v6146_v35 = vld [vmem:[%s7004_s3 + $0x1a0] ss:$16 sps:$4 sm:$0xff]  }
 0x23d   :  { %7147 = vst [vmem:[#allocation23_spill] sm:$0xff] %v6146_v35 }
 0x245   :  { %v5112_v40 = vpop.eup %5111 }
 0x246   :  { %v1040_v42 = vmul.f32 %v5112_v40, %v1039_v38  ;;  %v5114_v44 = vpop.eup %5113  ;;  %v6152_v38 = vld [vmem:[%s7004_s3 + $0x1c4] ss:$16 sps:$4 sm:$0xff]   ;;  %v6158_v40 = vld [vmem:[%s7004_s3 + $0x108] ss:$16 sps:$4 sm:$0xff]  }
 0x247   :  { %v1043_v47 = vsub.f32 1.0, %v5114_v44  ;;  %v1045_v39 = vmul.f32 %v5114_v44, %v5802_v57  ;;  %v5902_v57 = vld [vmem:[%s7004_s3 + $0x20] ss:$16 sps:$4 sm:$0xff]   ;;  %7148 = vst [vmem:[#allocation16_spill] sm:$0xff] %v6152_v38  ;;  %v6182_v44 = vld [vmem:[%s7004_s3 + $0x128] ss:$16 sps:$4 sm:$0xff]  }
 0x248   :  { %v1041_v43 = vadd.f32 %v1040_v42, %v1038_v41  ;;  %v6164_v41 = vld [vmem:[%s7004_s3 + $0x12c] ss:$16 sps:$4 sm:$0xff]   ;;  %v6170_v42 = vld [vmem:[%s7004_s3 + $0x1c0] ss:$16 sps:$4 sm:$0xff]  }
 0x249   :  { %7149 = vst [vmem:[#allocation25_spill] sm:$0xff] %v6170_v42 }
 0x24a   :  { %5115 = vtanh.f32 %v1041_v43  ;;  %v6176_v43 = vld [vmem:[%s7004_s3 + $0x1e4] ss:$16 sps:$4 sm:$0xff]  }
 0x24b   :  { %7150 = vst [vmem:[#allocation18_spill] sm:$0xff] %v6176_v43 }
 0x254   :  { %v5116_v49 = vpop.eup %5115 }
 0x255   :  { %v1044_v59 = vmul.f32 %v5116_v49, %v1043_v47  ;;  %v6194_v47 = vld [vmem:[%s7004_s3 + $0x1e0] ss:$16 sps:$4 sm:$0xff]   ;;  %v6201_v49 = vld [vmem:[%s7004_s3 + $0x148] ss:$16 sps:$4 sm:$0xff]  }
 0x256   :  { %7151 = vst [vmem:[#allocation26_spill] sm:$0xff] %v6194_v47 }
 0x257   :  { %v5883_v52 = vadd.f32 %v1045_v39, %v1044_v59  ;;  %v6215_v59 = vld [vmem:[%s7004_s3 + $0x16c] ss:$16 sps:$4 sm:$0xff]  }
 0x258   :  { %7153 = vst [vmem:[#allocation27_spill] sm:$0xff] %v6215_v59  ;;  %v6220_v39 = vld [vmem:[%s7004_s3 + $0x18c] ss:$16 sps:$4 sm:$0xff]  }
 0x259   :  { %1047 = vst [vmem:[#allocation2 + $0x1] sm:$0x1] %v5883_v52  ;;  %v1053_v50 = vpack.c.bf16 %v5883_v52, %v5883_v52  ;;  %7154 = vst [vmem:[#allocation22_spill] sm:$0xff] %v6220_v39 }
 0x25b   :  { %1470 = vmatprep.mubr.bf16.mxu0 %v1053_v50  ;;  %1511 = vmatprep.mubr.bf16.mxu1 %v1053_v50  ;;  %v6233_v50 = vld [vmem:[%s7004_s3 + $0x1ac] ss:$16 sps:$4 sm:$0xff]  }
 0x25c   :  { %1471 = vmatmul.mubr.bf16.vlgmr.msra.gmra.mrb[8].mxu0 %v1052_v55  ;;  %1512 = vmatmul.mubr.bf16.vlgmr.msra.gmra.mrb[8].mxu1 %v1052_v55  ;;  %v6227_v55 = vld [vmem:[%s7004_s3 + $0x188] ss:$16 sps:$4 sm:$0xff]   ;;  %7156 = vst [vmem:[#allocation24_spill] sm:$0xff] %v6233_v50 }
 0x25d   :  { %1935 = vmatpush1.bf16.msra.mxu0 %v5891_v45  ;;  %1976 = vmatpush1.bf16.msra.mxu1 %v5962_v2  ;;  %7155 = vst [vmem:[#allocation28_spill] sm:$0xff] %v6227_v55 }
 0x25e   :  { %1936 = vmatprep.subr.bf16.mxu0 %v5896_v53  ;;  %1977 = vmatprep.subr.bf16.mxu1 %v5980_v5 }
 0x261   :  { %1937 = vmatpush1.bf16.msra.mxu0 %v5902_v57  ;;  %1978 = vmatpush1.bf16.msra.mxu1 %v5986_v6 }
 0x262   :  { %1938 = vmatprep.subr.bf16.mxu0 %v5908_v54  ;;  %1979 = vmatprep.subr.bf16.mxu1 %v6004_v10 }
 0x265   :  { %1939 = vmatpush1.bf16.msra.mxu0 %v5914_v63  ;;  %1980 = vmatpush1.bf16.msra.mxu1 %v6010_v11 }
 0x266   :  { %1940 = vmatprep.subr.bf16.mxu0 %v5920_v48  ;;  %1981 = vmatprep.subr.bf16.mxu1 %v6033_v15 }
 0x269   :  { %1941 = vmatpush1.bf16.msra.mxu0 %v5926_v7  ;;  %1982 = vmatpush1.bf16.msra.mxu1 %v6028_v14 }
 0x26a   :  { %1942 = vmatprep.subr.bf16.mxu0 %v5933_v56  ;;  %1983 = vmatprep.subr.bf16.mxu1 %v6052_v18 }
 0x26d   :  { %1943 = vmatpush1.bf16.msra.mxu0 %v5938_v61  ;;  %1984 = vmatpush1.bf16.msra.mxu1 %v6058_v20 }
 0x26e   :  { %1944 = vmatprep.subr.bf16.mxu0 %v5945_v36  ;;  %1985 = vmatprep.subr.bf16.mxu1 %v6076_v23 }
 0x271   :  { %1945 = vmatpush1.bf16.msra.mxu0 %v5950_v58  ;;  %1986 = vmatpush1.bf16.msra.mxu1 %v6082_v24 }
 0x272   :  { %1946 = vmatprep.subr.bf16.mxu0 %v5968_v3  ;;  %1987 = vmatprep.subr.bf16.mxu1 %v6100_v27 }
 0x275   :  { %1947 = vmatpush1.bf16.msra.mxu0 %v5974_v4  ;;  %1988 = vmatpush1.bf16.msra.mxu1 %v6106_v28 }
 0x276   :  { %1948 = vmatprep.subr.bf16.mxu0 %v5992_v8  ;;  %1989 = vmatprep.subr.bf16.mxu1 %v6128_v32 }
 0x279   :  { %1949 = vmatpush1.bf16.msra.mxu0 %v5998_v9  ;;  %1990 = vmatpush1.bf16.msra.mxu1 %v6123_v31 }
 0x27a   :  { %1950 = vmatprep.subr.bf16.mxu0 %v6016_v12  ;;  %1991 = vmatprep.subr.bf16.mxu1 %v6139_v34 }
 0x27d   :  { %1951 = vmatpush1.bf16.msra.mxu0 %v6022_v13  ;;  %1992 = vmatpush1.bf16.msra.mxu1 %v6158_v40 }
 0x27e   :  { %1952 = vmatprep.subr.bf16.mxu0 %v6040_v16  ;;  %1993 = vmatprep.subr.bf16.mxu1 %v6164_v41 }
 0x281   :  { %1953 = vmatpush1.bf16.msra.mxu0 %v6046_v17  ;;  %1994 = vmatpush1.bf16.msra.mxu1 %v6182_v44 }
 0x282   :  { %1954 = vmatprep.subr.bf16.mxu0 %v6064_v21  ;;  %1995 = vmatprep.subr.bf16.mxu1 %v6188_v46 }
 0x285   :  { %1955 = vmatpush1.bf16.msra.mxu0 %v6070_v22  ;;  %1996 = vmatpush1.bf16.msra.mxu1 %v6201_v49 }
 0x286   :  { %1956 = vmatprep.subr.bf16.mxu0 %v6088_v25  ;;  %1997 = vmatprep.subr.bf16.mxu1 %v6215_v59 }
 0x289   :  { %1957 = vmatpush1.bf16.msra.mxu0 %v6094_v26  ;;  %1998 = vmatpush1.bf16.msra.mxu1 %v6210_v51 }
 0x28a   :  { %1958 = vmatprep.subr.bf16.mxu0 %v6117_v30  ;;  %1999 = vmatprep.subr.bf16.mxu1 %v6220_v39 }
 0x28d   :  { %1959 = vmatpush1.bf16.msra.mxu0 %v6112_v29  ;;  %2000 = vmatpush1.bf16.msra.mxu1 %v6227_v55 }
 0x28e   :  { %1960 = vmatprep.subr.bf16.mxu0 %v6133_v33  ;;  %2001 = vmatprep.subr.bf16.mxu1 %v6233_v50 }
 0x291   :  { %1961 = vmatpush1.bf16.msra.mxu0 %v6146_v35 }
 0x292   :  { %1962 = vmatprep.subr.bf16.mxu0 %v6152_v38  ;;  %v6263_v38 = vld [vmem:[%s7004_s3 + $0x1e8] ss:$16 sps:$4 sm:$0xff]  }
 0x293   :  { %7161 = vst [vmem:[#allocation34_spill] sm:$0xff] %v6263_v38 }
 0x295   :  { %1963 = vmatpush1.bf16.msra.mxu0 %v6170_v42  ;;  %v6257_v42 = vld [vmem:[%s7004_s3 + $0x1ec] ss:$16 sps:$4 sm:$0xff]  }
 0x296   :  { %1964 = vmatprep.subr.bf16.mxu0 %v6176_v43  ;;  %v6251_v43 = vld [vmem:[%s7004_s3 + $0x1c8] ss:$16 sps:$4 sm:$0xff]   ;;  %7160 = vst [vmem:[#allocation33_spill] sm:$0xff] %v6257_v42 }
 0x297   :  { %7159 = vst [vmem:[#allocation32_spill] sm:$0xff] %v6251_v43 }
 0x299   :  { %1965 = vmatpush1.bf16.msra.mxu0 %v6194_v47  ;;  %v6245_v47 = vld [vmem:[%s7004_s3 + $0x1cc] ss:$16 sps:$4 sm:$0xff]  }
 0x29a   :  { %2430 = vmatprep.subr.bf16.mxu0 %v5872_v19  ;;  %v6239_v19 = vld [vmem:[%s7004_s3 + $0x1a8] ss:$16 sps:$4 sm:$0xff]   ;;  %7158 = vst [vmem:[#allocation31_spill] sm:$0xff] %v6245_v47 }
 0x29b   :  { %7157 = vst [vmem:[#allocation29_spill] sm:$0xff] %v6239_v19  ;;  %2002 = vmatpush1.bf16.msra.mxu1 %v6239_v19 }
 0x29c   :  { %2003 = vmatprep.subr.bf16.mxu1 %v6245_v47 }
 0x29f   :  { %2004 = vmatpush1.bf16.msra.mxu1 %v6251_v43 }
 0x2a0   :  { %2005 = vmatprep.subr.bf16.mxu1 %v6257_v42 }
 0x2a3   :  { %2006 = vmatpush1.bf16.msra.mxu1 %v6263_v38 }
 0x2a4   :  { %2471 = vmatprep.subr.bf16.mxu1 %v5956_v1 }
 0x32f   :  { %v1472_v19 = vpop.f32.mrb[8].mxu0  ;;  %v1513_v47 = vpop.f32.mrb[8].mxu1 }
 0x330   :  { %v1520_v35 = vadd.f32 %v1472_v19, %v5778_v0  ;;  %v1474_v50 = vpop.f32.mrb[9].mxu0  ;;  %v1515_v33 = vpop.f32.mrb[9].mxu1 }
 0x331   :  { %v1476_v55 = vpop.f32.mrb[10].mxu0  ;;  %v1517_v29 = vpop.f32.mrb[10].mxu1  ;;  %v1521_v51 = vadd.f32 %v1474_v50, %v5782_v60  ;;  %v1535_v25 = vadd.f32 %v1515_v33, %v7140_v37  ;;  %v7165_v50 = vld [vmem:[#allocation20_spill] sm:$0xff] }
 0x332   :  { %v4428_v43 = vmul.f32 -1.442695, %v1520_v35  ;;  %v1477_v39 = vpop.f32.mrb[11].mxu0  ;;  %v1518_v30 = vpop.f32.mrb[11].mxu1  ;;  %v1534_v55 = vadd.f32 %v1513_v47, %v5795_v62  ;;  %v7163_v47 = vld [vmem:[#allocation27_spill] sm:$0xff] }
 0x333   :  { %v4429_v26 = vmul.f32 -1.442695, %v1521_v51  ;;  %v1546_v30 = vld [vmem:[%s1545_s28] sm:$0x1]  ;;  %v7164_v39 = vld [vmem:[#allocation19_spill] sm:$0xff] }
 0x334   :  { %5117 = vpow2.f32 %v4428_v43  ;;  %v1547_v43 = vmax.f32 %v1546_v30, 0.0  ;;  %v7171_v30 = vld [vmem:[#allocation24_spill] sm:$0xff] }
 0x335   :  { %5119 = vpow2.f32 %v4429_v26 }
 0x33e   :  { %v5118_v42 = vpop.eup %5117 }
 0x33f   :  { %v1528_v38 = vadd.f32 1.0, %v5118_v42  ;;  %v5120_v1 = vpop.eup %5119 }
 0x340   :  { %v1529_v59 = vadd.f32 1.0, %v5120_v1 }
 0x341   :  { %5121 = vrcp.f32 %v1528_v38 }
 0x342   :  { %5123 = vrcp.f32 %v1529_v59  ;;  %v1548_v59 = vpack.c.bf16 %v1547_v43, %v1547_v43  ;;  %v7174_v43 = vld [vmem:[#allocation16_spill] sm:$0xff] }
 0x34b   :  { %v5122_v19 = vpop.eup %5121 }
 0x34c   :  { %v1536_v29 = vmul.f32 %v5122_v19, %v1535_v25  ;;  %v5124_v26 = vpop.eup %5123  ;;  %v7166_v19 = vld [vmem:[#allocation21_spill] sm:$0xff] }
 0x34d   :  { %v1539_v42 = vsub.f32 1.0, %v5124_v26  ;;  %v1541_v33 = vmul.f32 %v5124_v26, %v5883_v52  ;;  %v7162_v52 = vld [vmem:[#allocation13_spill] sm:$0xff]  ;;  %v7170_v26 = vld [vmem:[#allocation15_spill] sm:$0xff] }
 0x34e   :  { %v1537_v35 = vadd.f32 %v1536_v29, %v1534_v55  ;;  %v7167_v55 = vld [vmem:[#allocation22_spill] sm:$0xff] }
 0x34f   :  { %v7168_v29 = vld [vmem:[#allocation14_spill] sm:$0xff] }
 0x350   :  { %5125 = vtanh.f32 %v1537_v35  ;;  %v7169_v35 = vld [vmem:[#allocation28_spill] sm:$0xff] }
 0x35a   :  { %v5126_v38 = vpop.eup %5125 }
 0x35b   :  { %v1540_v1 = vmul.f32 %v5126_v38, %v1539_v42  ;;  %v7172_v42 = vld [vmem:[#allocation23_spill] sm:$0xff]  ;;  %v7173_v38 = vld [vmem:[#allocation29_spill] sm:$0xff] }
 0x35d   :  { %v6276_v51 = vadd.f32 %v1541_v33, %v1540_v1  ;;  %v7175_v1 = vld [vmem:[#allocation31_spill] sm:$0xff]  ;;  %v7176_v33 = vld [vmem:[#allocation25_spill] sm:$0xff] }
 0x35f   :  { %1543 = vst [vmem:[#allocation2 + $0x2] sm:$0x1] %v6276_v51  ;;  %v1549_v25 = vpack.c.bf16 %v6276_v51, %v6276_v51 }
 0x361   :  { %1966 = vmatprep.mubr.bf16.mxu0 %v1549_v25  ;;  %2007 = vmatprep.mubr.bf16.mxu1 %v1549_v25  ;;  %v7178_v25 = vld [vmem:[#allocation18_spill] sm:$0xff] }
 0x362   :  { %1967 = vmatmul.mubr.bf16.vlgmr.msra.gmra.mrb[12].mxu0 %v1548_v59  ;;  %2008 = vmatmul.mubr.bf16.vlgmr.msra.gmra.mrb[12].mxu1 %v1548_v59  ;;  %v7177_v59 = vld [vmem:[#allocation32_spill] sm:$0xff] }
 0x363   :  { %2431 = vmatpush1.bf16.msra.mxu0 %v5891_v45  ;;  %2472 = vmatpush1.bf16.msra.mxu1 %v5962_v2 }
 0x364   :  { %2432 = vmatprep.subr.bf16.mxu0 %v5896_v53  ;;  %2473 = vmatprep.subr.bf16.mxu1 %v5980_v5 }
 0x367   :  { %2433 = vmatpush1.bf16.msra.mxu0 %v5902_v57  ;;  %2474 = vmatpush1.bf16.msra.mxu1 %v5986_v6 }
 0x368   :  { %2434 = vmatprep.subr.bf16.mxu0 %v5908_v54  ;;  %2475 = vmatprep.subr.bf16.mxu1 %v6004_v10 }
 0x36b   :  { %2435 = vmatpush1.bf16.msra.mxu0 %v5914_v63  ;;  %2476 = vmatpush1.bf16.msra.mxu1 %v6010_v11 }
 0x36c   :  { %2436 = vmatprep.subr.bf16.mxu0 %v5920_v48  ;;  %2477 = vmatprep.subr.bf16.mxu1 %v6033_v15 }
 0x36f   :  { %2437 = vmatpush1.bf16.msra.mxu0 %v5926_v7  ;;  %2478 = vmatpush1.bf16.msra.mxu1 %v6028_v14 }
 0x370   :  { %2438 = vmatprep.subr.bf16.mxu0 %v5933_v56  ;;  %2479 = vmatprep.subr.bf16.mxu1 %v6052_v18 }
 0x373   :  { %2439 = vmatpush1.bf16.msra.mxu0 %v5938_v61  ;;  %2480 = vmatpush1.bf16.msra.mxu1 %v6058_v20 }
 0x374   :  { %2440 = vmatprep.subr.bf16.mxu0 %v5945_v36  ;;  %2481 = vmatprep.subr.bf16.mxu1 %v6076_v23 }
 0x377   :  { %2441 = vmatpush1.bf16.msra.mxu0 %v5950_v58  ;;  %2482 = vmatpush1.bf16.msra.mxu1 %v6082_v24 }
 0x378   :  { %2442 = vmatprep.subr.bf16.mxu0 %v5968_v3  ;;  %2483 = vmatprep.subr.bf16.mxu1 %v6100_v27 }
 0x37b   :  { %2443 = vmatpush1.bf16.msra.mxu0 %v5974_v4  ;;  %2484 = vmatpush1.bf16.msra.mxu1 %v6106_v28 }
 0x37c   :  { %2444 = vmatprep.subr.bf16.mxu0 %v5992_v8  ;;  %2485 = vmatprep.subr.bf16.mxu1 %v6128_v32 }
 0x37f   :  { %2445 = vmatpush1.bf16.msra.mxu0 %v5998_v9  ;;  %2486 = vmatpush1.bf16.msra.mxu1 %v6123_v31 }
 0x380   :  { %2446 = vmatprep.subr.bf16.mxu0 %v6016_v12  ;;  %2487 = vmatprep.subr.bf16.mxu1 %v6139_v34 }
 0x383   :  { %2447 = vmatpush1.bf16.msra.mxu0 %v6022_v13  ;;  %2488 = vmatpush1.bf16.msra.mxu1 %v6158_v40 }
 0x384   :  { %2448 = vmatprep.subr.bf16.mxu0 %v6040_v16  ;;  %2489 = vmatprep.subr.bf16.mxu1 %v6164_v41 }
 0x387   :  { %2449 = vmatpush1.bf16.msra.mxu0 %v6046_v17  ;;  %2490 = vmatpush1.bf16.msra.mxu1 %v6182_v44 }
 0x388   :  { %2450 = vmatprep.subr.bf16.mxu0 %v6064_v21  ;;  %2491 = vmatprep.subr.bf16.mxu1 %v6188_v46 }
 0x38b   :  { %2451 = vmatpush1.bf16.msra.mxu0 %v6070_v22  ;;  %2492 = vmatpush1.bf16.msra.mxu1 %v6201_v49 }
 0x38c   :  { %2452 = vmatprep.subr.bf16.mxu0 %v7162_v52  ;;  %2493 = vmatprep.subr.bf16.mxu1 %v7163_v47 }
 0x38f   :  { %2453 = vmatpush1.bf16.msra.mxu0 %v7164_v39  ;;  %2494 = vmatpush1.bf16.msra.mxu1 %v7165_v50 }
 0x390   :  { %2454 = vmatprep.subr.bf16.mxu0 %v7166_v19  ;;  %2495 = vmatprep.subr.bf16.mxu1 %v7167_v55 }
 0x393   :  { %2455 = vmatpush1.bf16.msra.mxu0 %v7168_v29  ;;  %2496 = vmatpush1.bf16.msra.mxu1 %v7169_v35  ;;  %v7179_v29 = vld [vmem:[#allocation33_spill] sm:$0xff]  ;;  %v7180_v35 = vld [vmem:[#allocation26_spill] sm:$0xff] }
 0x394   :  { %2456 = vmatprep.subr.bf16.mxu0 %v7170_v26  ;;  %2497 = vmatprep.subr.bf16.mxu1 %v7171_v30  ;;  %v7181_v26 = vld [vmem:[#allocation34_spill] sm:$0xff]  ;;  %v7182_v30 = vld [vmem:[#allocation12_spill] sm:$0xff] }
 0x397   :  { %2457 = vmatpush1.bf16.msra.mxu0 %v7172_v42  ;;  %2498 = vmatpush1.bf16.msra.mxu1 %v7173_v38  ;;  %v7183_v42 = vld [vmem:[#allocation17_spill] sm:$0xff] }
 0x398   :  { %2458 = vmatprep.subr.bf16.mxu0 %v7174_v43  ;;  %2499 = vmatprep.subr.bf16.mxu1 %v7175_v1 }
 0x39b   :  { %2459 = vmatpush1.bf16.msra.mxu0 %v7176_v33  ;;  %2500 = vmatpush1.bf16.msra.mxu1 %v7177_v59 }
 0x39c   :  { %2460 = vmatprep.subr.bf16.mxu0 %v7178_v25  ;;  %2501 = vmatprep.subr.bf16.mxu1 %v7179_v29 }
 0x39f   :  { %2461 = vmatpush1.bf16.msra.mxu0 %v7180_v35  ;;  %2502 = vmatpush1.bf16.msra.mxu1 %v7181_v26 }
 0x3a0   :  { %2926 = vmatprep.subr.bf16.mxu0 %v7182_v30  ;;  %2967 = vmatprep.subr.bf16.mxu1 %v7183_v42 }
 0x435   :  { %v1968_v38 = vpop.f32.mrb[12].mxu0  ;;  %v2009_v43 = vpop.f32.mrb[12].mxu1 }
 0x436   :  { %v2016_v1 = vadd.f32 %v1968_v38, %v5778_v0  ;;  %v1970_v55 = vpop.f32.mrb[13].mxu0  ;;  %v2011_v33 = vpop.f32.mrb[13].mxu1 }
 0x437   :  { %v1972_v19 = vpop.f32.mrb[14].mxu0  ;;  %v2013_v59 = vpop.f32.mrb[14].mxu1  ;;  %v2017_v29 = vadd.f32 %v1970_v55, %v5782_v60  ;;  %v2031_v52 = vadd.f32 %v2011_v33, %v7140_v37 }
 0x438   :  { %v4495_v50 = vmul.f32 -1.442695, %v2016_v1  ;;  %v1973_v25 = vpop.f32.mrb[15].mxu0  ;;  %v2014_v39 = vpop.f32.mrb[15].mxu1  ;;  %v2030_v19 = vadd.f32 %v2009_v43, %v5795_v62  ;;  %v2538_v43 = vld [vmem:[%s2537_s17] sm:$0x1] }
 0x439   :  { %v4496_v35 = vmul.f32 -1.442695, %v2017_v29 }
 0x43a   :  { %5127 = vpow2.f32 %v4495_v50  ;;  %v2042_v50 = vld [vmem:[%s2041_s12] sm:$0x1] }
 0x43b   :  { %5129 = vpow2.f32 %v4496_v35  ;;  %v2043_v35 = vmax.f32 %v2042_v50, 0.0  ;;  %v6447_v50 = vld [vmem:[%s7004_s3 + $0x24] ss:$16 sps:$4 sm:$0xff]  }
 0x444   :  { %v5128_v26 = vpop.eup %5127 }
 0x445   :  { %v2024_v30 = vadd.f32 1.0, %v5128_v26  ;;  %v5130_v42 = vpop.eup %5129 }
 0x446   :  { %v2025_v47 = vadd.f32 1.0, %v5130_v42 }
 0x447   :  { %5131 = vrcp.f32 %v2024_v30 }
 0x448   :  { %5133 = vrcp.f32 %v2025_v47  ;;  %v2044_v47 = vpack.c.bf16 %v2043_v35, %v2043_v35  ;;  %v6465_v35 = vld [vmem:[%s7004_s3 + $0x40] ss:$16 sps:$4 sm:$0xff]  }
 0x451   :  { %v5132_v38 = vpop.eup %5131 }
 0x452   :  { %v2032_v59 = vmul.f32 %v5132_v38, %v2031_v52  ;;  %v5134_v39 = vpop.eup %5133  ;;  %v2539_v38 = vmax.f32 %v2538_v43, 0.0  ;;  %v6752_v43 = vld [vmem:[%s7004_s3 + $0x148] ss:$16 sps:$4 sm:$0xff]  }
 0x453   :  { %v2035_v55 = vsub.f32 1.0, %v5134_v39  ;;  %v2037_v33 = vmul.f32 %v5134_v39, %v6276_v51  ;;  %v6442_v39 = vld [vmem:[%s7004_s3] ss:$16 sps:$4 sm:$0xff]  }
 0x454   :  { %v2033_v1 = vadd.f32 %v2032_v59, %v2030_v19 }
 0x456   :  { %5135 = vtanh.f32 %v2033_v1  ;;  %v2540_v1 = vpack.c.bf16 %v2539_v38, %v2539_v38  ;;  %v6771_v38 = vld [vmem:[%s7004_s3 + $0x18c] ss:$16 sps:$4 sm:$0xff]  }
 0x460   :  { %v5136_v29 = vpop.eup %5135 }
 0x461   :  { %v2036_v26 = vmul.f32 %v5136_v29, %v2035_v55  ;;  %v6453_v55 = vld [vmem:[%s7004_s3 + $0x20] ss:$16 sps:$4 sm:$0xff]   ;;  %v6459_v29 = vld [vmem:[%s7004_s3 + $0x44] ss:$16 sps:$4 sm:$0xff]  }
 0x463   :  { %v6353_v25 = vadd.f32 %v2037_v33, %v2036_v26  ;;  %v6471_v26 = vld [vmem:[%s7004_s3 + $0x64] ss:$16 sps:$4 sm:$0xff]   ;;  %v6477_v33 = vld [vmem:[%s7004_s3 + $0x60] ss:$16 sps:$4 sm:$0xff]  }
 0x465   :  { %2039 = vst [vmem:[#allocation2 + $0x3] sm:$0x1] %v6353_v25  ;;  %v2045_v52 = vpack.c.bf16 %v6353_v25, %v6353_v25 }
 0x467   :  { %2462 = vmatprep.mubr.bf16.mxu0 %v2045_v52  ;;  %2503 = vmatprep.mubr.bf16.mxu1 %v2045_v52  ;;  %v6496_v52 = vld [vmem:[%s7004_s3 + $0xa4] ss:$16 sps:$4 sm:$0xff]  }
 0x468   :  { %2463 = vmatmul.mubr.bf16.vlgmr.msra.gmra.mrb[16].mxu0 %v2044_v47  ;;  %2504 = vmatmul.mubr.bf16.vlgmr.msra.gmra.mrb[16].mxu1 %v2044_v47  ;;  %v6489_v47 = vld [vmem:[%s7004_s3 + $0x80] ss:$16 sps:$4 sm:$0xff]  }
 0x469   :  { %2927 = vmatpush1.bf16.msra.mxu0 %v5891_v45  ;;  %2968 = vmatpush1.bf16.msra.mxu1 %v5962_v2  ;;  %v7184_v45 = vld [vmem:[#allocation13_spill] sm:$0xff] }
 0x46a   :  { %2928 = vmatprep.subr.bf16.mxu0 %v5896_v53  ;;  %2969 = vmatprep.subr.bf16.mxu1 %v5980_v5  ;;  %v7185_v53 = vld [vmem:[#allocation27_spill] sm:$0xff]  ;;  %v7195_v2 = vld [vmem:[#allocation29_spill] sm:$0xff] }
 0x46b   :  { %v7198_v5 = vld [vmem:[#allocation25_spill] sm:$0xff] }
 0x46d   :  { %2929 = vmatpush1.bf16.msra.mxu0 %v5902_v57  ;;  %2970 = vmatpush1.bf16.msra.mxu1 %v5986_v6  ;;  %v7186_v57 = vld [vmem:[#allocation19_spill] sm:$0xff]  ;;  %v7199_v6 = vld [vmem:[#allocation32_spill] sm:$0xff] }
 0x46e   :  { %2930 = vmatprep.subr.bf16.mxu0 %v5908_v54  ;;  %2971 = vmatprep.subr.bf16.mxu1 %v6004_v10  ;;  %v7187_v54 = vld [vmem:[#allocation20_spill] sm:$0xff]  ;;  %v7202_v10 = vld [vmem:[#allocation26_spill] sm:$0xff] }
 0x471   :  { %2931 = vmatpush1.bf16.msra.mxu0 %v5914_v63  ;;  %2972 = vmatpush1.bf16.msra.mxu1 %v6010_v11  ;;  %v7188_v63 = vld [vmem:[#allocation21_spill] sm:$0xff]  ;;  %v7203_v11 = vld [vmem:[#allocation34_spill] sm:$0xff] }
 0x472   :  { %2932 = vmatprep.subr.bf16.mxu0 %v5920_v48  ;;  %2973 = vmatprep.subr.bf16.mxu1 %v6033_v15  ;;  %v7189_v48 = vld [vmem:[#allocation22_spill] sm:$0xff] }
 0x475   :  { %2933 = vmatpush1.bf16.msra.mxu0 %v5926_v7  ;;  %2974 = vmatpush1.bf16.msra.mxu1 %v6028_v14  ;;  %v7190_v7 = vld [vmem:[#allocation14_spill] sm:$0xff] }
 0x476   :  { %2934 = vmatprep.subr.bf16.mxu0 %v5933_v56  ;;  %2975 = vmatprep.subr.bf16.mxu1 %v6052_v18  ;;  %v7191_v56 = vld [vmem:[#allocation28_spill] sm:$0xff] }
 0x477   :  { %7213 = vst [vmem:[#allocation28_spill] sm:$0xff] %v6771_v38 }
 0x479   :  { %2935 = vmatpush1.bf16.msra.mxu0 %v5938_v61  ;;  %2976 = vmatpush1.bf16.msra.mxu1 %v6058_v20  ;;  %v7192_v61 = vld [vmem:[#allocation15_spill] sm:$0xff] }
 0x47a   :  { %2936 = vmatprep.subr.bf16.mxu0 %v5945_v36  ;;  %2977 = vmatprep.subr.bf16.mxu1 %v6076_v23  ;;  %v7193_v36 = vld [vmem:[#allocation24_spill] sm:$0xff] }
 0x47d   :  { %2937 = vmatpush1.bf16.msra.mxu0 %v5950_v58  ;;  %2978 = vmatpush1.bf16.msra.mxu1 %v6082_v24  ;;  %v7194_v58 = vld [vmem:[#allocation23_spill] sm:$0xff] }
 0x47e   :  { %2938 = vmatprep.subr.bf16.mxu0 %v5968_v3  ;;  %2979 = vmatprep.subr.bf16.mxu1 %v6100_v27  ;;  %v7196_v3 = vld [vmem:[#allocation16_spill] sm:$0xff] }
 0x481   :  { %2939 = vmatpush1.bf16.msra.mxu0 %v5974_v4  ;;  %2980 = vmatpush1.bf16.msra.mxu1 %v6106_v28  ;;  %v7197_v4 = vld [vmem:[#allocation31_spill] sm:$0xff] }
 0x482   :  { %2940 = vmatprep.subr.bf16.mxu0 %v5992_v8  ;;  %2981 = vmatprep.subr.bf16.mxu1 %v6128_v32  ;;  %v7200_v8 = vld [vmem:[#allocation18_spill] sm:$0xff] }
 0x485   :  { %2941 = vmatpush1.bf16.msra.mxu0 %v5998_v9  ;;  %2982 = vmatpush1.bf16.msra.mxu1 %v6123_v31  ;;  %v7201_v9 = vld [vmem:[#allocation33_spill] sm:$0xff] }
 0x486   :  { %2942 = vmatprep.subr.bf16.mxu0 %v6016_v12  ;;  %2983 = vmatprep.subr.bf16.mxu1 %v6139_v34  ;;  %v6423_v12 = vld [vmem:[%s7004_s3 + $0x4] ss:$16 sps:$4 sm:$0xff]  }
 0x489   :  { %2943 = vmatpush1.bf16.msra.mxu0 %v6022_v13  ;;  %2984 = vmatpush1.bf16.msra.mxu1 %v6158_v40 }
 0x48a   :  { %2944 = vmatprep.subr.bf16.mxu0 %v6040_v16  ;;  %2985 = vmatprep.subr.bf16.mxu1 %v6164_v41 }
 0x48d   :  { %2945 = vmatpush1.bf16.msra.mxu0 %v6046_v17  ;;  %2986 = vmatpush1.bf16.msra.mxu1 %v6182_v44 }
 0x48e   :  { %2946 = vmatprep.subr.bf16.mxu0 %v6064_v21  ;;  %2987 = vmatprep.subr.bf16.mxu1 %v6188_v46 }
 0x491   :  { %2947 = vmatpush1.bf16.msra.mxu0 %v6070_v22  ;;  %2988 = vmatpush1.bf16.msra.mxu1 %v6201_v49 }
 0x492   :  { %2948 = vmatprep.subr.bf16.mxu0 %v7184_v45  ;;  %2989 = vmatprep.subr.bf16.mxu1 %v7185_v53  ;;  %v6501_v45 = vld [vmem:[%s7004_s3 + $0xa0] ss:$16 sps:$4 sm:$0xff]   ;;  %v6507_v53 = vld [vmem:[%s7004_s3 + $0xc] ss:$16 sps:$4 sm:$0xff]  }
 0x495   :  { %2949 = vmatpush1.bf16.msra.mxu0 %v7186_v57  ;;  %2990 = vmatpush1.bf16.msra.mxu1 %v7187_v54  ;;  %v6513_v57 = vld [vmem:[%s7004_s3 + $0x8] ss:$16 sps:$4 sm:$0xff]   ;;  %v6519_v54 = vld [vmem:[%s7004_s3 + $0xc4] ss:$16 sps:$4 sm:$0xff]  }
 0x496   :  { %2950 = vmatprep.subr.bf16.mxu0 %v7188_v63  ;;  %2991 = vmatprep.subr.bf16.mxu1 %v7189_v48  ;;  %v6525_v63 = vld [vmem:[%s7004_s3 + $0xc0] ss:$16 sps:$4 sm:$0xff]   ;;  %v6531_v48 = vld [vmem:[%s7004_s3 + $0x2c] ss:$16 sps:$4 sm:$0xff]  }
 0x499   :  { %2951 = vmatpush1.bf16.msra.mxu0 %v7190_v7  ;;  %2992 = vmatpush1.bf16.msra.mxu1 %v7191_v56  ;;  %v6537_v7 = vld [vmem:[%s7004_s3 + $0x28] ss:$16 sps:$4 sm:$0xff]   ;;  %v6543_v56 = vld [vmem:[%s7004_s3 + $0xe4] ss:$16 sps:$4 sm:$0xff]  }
 0x49a   :  { %2952 = vmatprep.subr.bf16.mxu0 %v7192_v61  ;;  %2993 = vmatprep.subr.bf16.mxu1 %v7193_v36  ;;  %v6549_v61 = vld [vmem:[%s7004_s3 + $0xe0] ss:$16 sps:$4 sm:$0xff]   ;;  %v6555_v36 = vld [vmem:[%s7004_s3 + $0x4c] ss:$16 sps:$4 sm:$0xff]  }
 0x49d   :  { %2953 = vmatpush1.bf16.msra.mxu0 %v7194_v58  ;;  %2994 = vmatpush1.bf16.msra.mxu1 %v7195_v2  ;;  %v6561_v58 = vld [vmem:[%s7004_s3 + $0x48] ss:$16 sps:$4 sm:$0xff]   ;;  %v6567_v2 = vld [vmem:[%s7004_s3 + $0x104] ss:$16 sps:$4 sm:$0xff]  }
 0x49e   :  { %2954 = vmatprep.subr.bf16.mxu0 %v7196_v3  ;;  %2995 = vmatprep.subr.bf16.mxu1 %v7197_v4  ;;  %v6573_v3 = vld [vmem:[%s7004_s3 + $0x100] ss:$16 sps:$4 sm:$0xff]   ;;  %v6579_v4 = vld [vmem:[%s7004_s3 + $0x68] ss:$16 sps:$4 sm:$0xff]  }
 0x4a1   :  { %2955 = vmatpush1.bf16.msra.mxu0 %v7198_v5  ;;  %2996 = vmatpush1.bf16.msra.mxu1 %v7199_v6  ;;  %v6584_v5 = vld [vmem:[%s7004_s3 + $0x6c] ss:$16 sps:$4 sm:$0xff]   ;;  %v6591_v6 = vld [vmem:[%s7004_s3 + $0x124] ss:$16 sps:$4 sm:$0xff]  }
 0x4a2   :  { %2956 = vmatprep.subr.bf16.mxu0 %v7200_v8  ;;  %2997 = vmatprep.subr.bf16.mxu1 %v7201_v9  ;;  %v6597_v8 = vld [vmem:[%s7004_s3 + $0x120] ss:$16 sps:$4 sm:$0xff]   ;;  %v6603_v9 = vld [vmem:[%s7004_s3 + $0x8c] ss:$16 sps:$4 sm:$0xff]  }
 0x4a5   :  { %2957 = vmatpush1.bf16.msra.mxu0 %v7202_v10  ;;  %2998 = vmatpush1.bf16.msra.mxu1 %v7203_v11  ;;  %v6609_v10 = vld [vmem:[%s7004_s3 + $0x88] ss:$16 sps:$4 sm:$0xff]   ;;  %v6615_v11 = vld [vmem:[%s7004_s3 + $0x144] ss:$16 sps:$4 sm:$0xff]  }
 0x4a6   :  { %3422 = vmatprep.subr.bf16.mxu0 %v6423_v12  ;;  %3463 = vmatprep.subr.bf16.mxu1 %v6507_v53 }
 0x53b   :  { %v2464_v13 = vpop.f32.mrb[16].mxu0  ;;  %v2505_v14 = vpop.f32.mrb[16].mxu1 }
 0x53c   :  { %v2512_v15 = vadd.f32 %v2464_v13, %v5778_v0  ;;  %v2466_v16 = vpop.f32.mrb[17].mxu0  ;;  %v2507_v17 = vpop.f32.mrb[17].mxu1  ;;  %v2526_v44 = vadd.f32 %v2505_v14, %v5795_v62  ;;  %v6621_v13 = vld [vmem:[%s7004_s3 + $0x140] ss:$16 sps:$4 sm:$0xff]   ;;  %v6627_v14 = vld [vmem:[%s7004_s3 + $0xac] ss:$16 sps:$4 sm:$0xff]  }
 0x53d   :  { %v2468_v18 = vpop.f32.mrb[18].mxu0  ;;  %v2509_v20 = vpop.f32.mrb[18].mxu1  ;;  %v2513_v24 = vadd.f32 %v2466_v16, %v5782_v60  ;;  %v2527_v40 = vadd.f32 %v2507_v17, %v7140_v37  ;;  %v6639_v16 = vld [vmem:[%s7004_s3 + $0x164] ss:$16 sps:$4 sm:$0xff]   ;;  %v6645_v17 = vld [vmem:[%s7004_s3 + $0x160] ss:$16 sps:$4 sm:$0xff]  }
 0x53e   :  { %v4562_v21 = vmul.f32 -1.442695, %v2512_v15  ;;  %v2469_v22 = vpop.f32.mrb[19].mxu0  ;;  %v2510_v23 = vpop.f32.mrb[19].mxu1  ;;  %v6633_v15 = vld [vmem:[%s7004_s3 + $0xa8] ss:$16 sps:$4 sm:$0xff]  }
 0x53f   :  { %v4563_v27 = vmul.f32 -1.442695, %v2513_v24  ;;  %v6651_v18 = vld [vmem:[%s7004_s3 + $0xcc] ss:$16 sps:$4 sm:$0xff]   ;;  %v6657_v20 = vld [vmem:[%s7004_s3 + $0xc8] ss:$16 sps:$4 sm:$0xff]  }
 0x540   :  { %5137 = vpow2.f32 %v4562_v21  ;;  %v6663_v21 = vld [vmem:[%s7004_s3 + $0x180] ss:$16 sps:$4 sm:$0xff]   ;;  %v6668_v22 = vld [vmem:[%s7004_s3 + $0x184] ss:$16 sps:$4 sm:$0xff]   ;;  %v6674_v23 = vld [vmem:[%s7004_s3 + $0xe8] ss:$16 sps:$4 sm:$0xff]  }
 0x541   :  { %5139 = vpow2.f32 %v4563_v27  ;;  %7204 = vst [vmem:[#allocation12_spill] sm:$0xff] %v6663_v21  ;;  %7205 = vst [vmem:[#allocation17_spill] sm:$0xff] %v6668_v22  ;;  %v6679_v24 = vld [vmem:[%s7004_s3 + $0xec] ss:$16 sps:$4 sm:$0xff]   ;;  %v6684_v27 = vld [vmem:[%s7004_s3 + $0x1a4] ss:$16 sps:$4 sm:$0xff]  }
 0x542   :  { %7206 = vst [vmem:[#allocation13_spill] sm:$0xff] %v6684_v27 }
 0x54a   :  { %v5138_v28 = vpop.eup %5137 }
 0x54b   :  { %v2520_v31 = vadd.f32 1.0, %v5138_v28  ;;  %v5140_v32 = vpop.eup %5139  ;;  %v6690_v28 = vld [vmem:[%s7004_s3 + $0x10c] ss:$16 sps:$4 sm:$0xff]  }
 0x54c   :  { %v2521_v34 = vadd.f32 1.0, %v5140_v32  ;;  %v6703_v32 = vld [vmem:[%s7004_s3 + $0x1c4] ss:$16 sps:$4 sm:$0xff]  }
 0x54d   :  { %5141 = vrcp.f32 %v2520_v31  ;;  %v6697_v31 = vld [vmem:[%s7004_s3 + $0x1a0] ss:$16 sps:$4 sm:$0xff]   ;;  %7208 = vst [vmem:[#allocation19_spill] sm:$0xff] %v6703_v32 }
 0x54e   :  { %5143 = vrcp.f32 %v2521_v34  ;;  %7207 = vst [vmem:[#allocation27_spill] sm:$0xff] %v6697_v31  ;;  %v6709_v34 = vld [vmem:[%s7004_s3 + $0x108] ss:$16 sps:$4 sm:$0xff]  }
 0x557   :  { %v5142_v41 = vpop.eup %5141 }
 0x558   :  { %v2528_v46 = vmul.f32 %v5142_v41, %v2527_v40  ;;  %v5144_v51 = vpop.eup %5143  ;;  %v6715_v40 = vld [vmem:[%s7004_s3 + $0x12c] ss:$16 sps:$4 sm:$0xff]   ;;  %v6721_v41 = vld [vmem:[%s7004_s3 + $0x1c0] ss:$16 sps:$4 sm:$0xff]  }
 0x559   :  { %v2531_v30 = vsub.f32 1.0, %v5144_v51  ;;  %v2533_v37 = vmul.f32 %v5144_v51, %v6353_v25  ;;  %v6484_v25 = vld [vmem:[%s7004_s3 + $0x84] ss:$16 sps:$4 sm:$0xff]   ;;  %7209 = vst [vmem:[#allocation20_spill] sm:$0xff] %v6721_v41  ;;  %v6745_v51 = vld [vmem:[%s7004_s3 + $0x1e0] ss:$16 sps:$4 sm:$0xff]  }
 0x55a   :  { %v2529_v49 = vadd.f32 %v2528_v46, %v2526_v44  ;;  %v6727_v44 = vld [vmem:[%s7004_s3 + $0x1e4] ss:$16 sps:$4 sm:$0xff]   ;;  %v6733_v46 = vld [vmem:[%s7004_s3 + $0x128] ss:$16 sps:$4 sm:$0xff]   ;;  %7211 = vst [vmem:[#allocation22_spill] sm:$0xff] %v6745_v51 }
 0x55b   :  { %7210 = vst [vmem:[#allocation21_spill] sm:$0xff] %v6727_v44 }
 0x55c   :  { %5145 = vtanh.f32 %v2529_v49  ;;  %v6739_v49 = vld [vmem:[%s7004_s3 + $0x14c] ss:$16 sps:$4 sm:$0xff]  }
 0x566   :  { %v5146_v42 = vpop.eup %5145 }
 0x567   :  { %v2532_v19 = vmul.f32 %v5146_v42, %v2531_v30  ;;  %v6761_v30 = vld [vmem:[%s7004_s3 + $0x168] ss:$16 sps:$4 sm:$0xff]   ;;  %v6766_v42 = vld [vmem:[%s7004_s3 + $0x16c] ss:$16 sps:$4 sm:$0xff]  }
 0x568   :  { %7212 = vst [vmem:[#allocation14_spill] sm:$0xff] %v6761_v30 }
 0x569   :  { %v6434_v59 = vadd.f32 %v2533_v37, %v2532_v19  ;;  %v6784_v19 = vld [vmem:[%s7004_s3 + $0x1ac] ss:$16 sps:$4 sm:$0xff]   ;;  %v6790_v37 = vld [vmem:[%s7004_s3 + $0x1a8] ss:$16 sps:$4 sm:$0xff]  }
 0x56a   :  { %7215 = vst [vmem:[#allocation24_spill] sm:$0xff] %v6784_v19  ;;  %7216 = vst [vmem:[#allocation23_spill] sm:$0xff] %v6790_v37 }
 0x56b   :  { %2535 = vst [vmem:[#allocation2 + $0x4] sm:$0x1] %v6434_v59  ;;  %v2541_v62 = vpack.c.bf16 %v6434_v59, %v6434_v59 }
 0x56d   :  { %2958 = vmatprep.mubr.bf16.mxu0 %v2541_v62  ;;  %2999 = vmatprep.mubr.bf16.mxu1 %v2541_v62  ;;  %v6802_v62 = vld [vmem:[%s7004_s3 + $0x1c8] ss:$16 sps:$4 sm:$0xff]  }
 0x56e   :  { %2959 = vmatmul.mubr.bf16.vlgmr.msra.gmra.mrb[20].mxu0 %v2540_v1  ;;  %3000 = vmatmul.mubr.bf16.vlgmr.msra.gmra.mrb[20].mxu1 %v2540_v1  ;;  %v6796_v1 = vld [vmem:[%s7004_s3 + $0x1cc] ss:$16 sps:$4 sm:$0xff]   ;;  %7218 = vst [vmem:[#allocation16_spill] sm:$0xff] %v6802_v62 }
 0x56f   :  { %3423 = vmatpush1.bf16.msra.mxu0 %v6442_v39  ;;  %3464 = vmatpush1.bf16.msra.mxu1 %v6513_v57  ;;  %7217 = vst [vmem:[#allocation29_spill] sm:$0xff] %v6796_v1 }
 0x570   :  { %3424 = vmatprep.subr.bf16.mxu0 %v6447_v50  ;;  %3465 = vmatprep.subr.bf16.mxu1 %v6531_v48 }
 0x573   :  { %3425 = vmatpush1.bf16.msra.mxu0 %v6453_v55  ;;  %3466 = vmatpush1.bf16.msra.mxu1 %v6537_v7 }
 0x574   :  { %3426 = vmatprep.subr.bf16.mxu0 %v6459_v29  ;;  %3467 = vmatprep.subr.bf16.mxu1 %v6555_v36 }
 0x577   :  { %3427 = vmatpush1.bf16.msra.mxu0 %v6465_v35  ;;  %3468 = vmatpush1.bf16.msra.mxu1 %v6561_v58 }
 0x578   :  { %3428 = vmatprep.subr.bf16.mxu0 %v6471_v26  ;;  %3469 = vmatprep.subr.bf16.mxu1 %v6584_v5 }
 0x57b   :  { %3429 = vmatpush1.bf16.msra.mxu0 %v6477_v33  ;;  %3470 = vmatpush1.bf16.msra.mxu1 %v6579_v4 }
 0x57c   :  { %3430 = vmatprep.subr.bf16.mxu0 %v6484_v25  ;;  %3471 = vmatprep.subr.bf16.mxu1 %v6603_v9 }
 0x57f   :  { %3431 = vmatpush1.bf16.msra.mxu0 %v6489_v47  ;;  %3472 = vmatpush1.bf16.msra.mxu1 %v6609_v10 }
 0x580   :  { %3432 = vmatprep.subr.bf16.mxu0 %v6496_v52  ;;  %3473 = vmatprep.subr.bf16.mxu1 %v6627_v14 }
 0x583   :  { %3433 = vmatpush1.bf16.msra.mxu0 %v6501_v45  ;;  %3474 = vmatpush1.bf16.msra.mxu1 %v6633_v15 }
 0x584   :  { %3434 = vmatprep.subr.bf16.mxu0 %v6519_v54  ;;  %3475 = vmatprep.subr.bf16.mxu1 %v6651_v18 }
 0x587   :  { %3435 = vmatpush1.bf16.msra.mxu0 %v6525_v63  ;;  %3476 = vmatpush1.bf16.msra.mxu1 %v6657_v20 }
 0x588   :  { %3436 = vmatprep.subr.bf16.mxu0 %v6543_v56  ;;  %3477 = vmatprep.subr.bf16.mxu1 %v6679_v24 }
 0x58b   :  { %3437 = vmatpush1.bf16.msra.mxu0 %v6549_v61  ;;  %3478 = vmatpush1.bf16.msra.mxu1 %v6674_v23 }
 0x58c   :  { %3438 = vmatprep.subr.bf16.mxu0 %v6567_v2  ;;  %3479 = vmatprep.subr.bf16.mxu1 %v6690_v28 }
 0x58f   :  { %3439 = vmatpush1.bf16.msra.mxu0 %v6573_v3  ;;  %3480 = vmatpush1.bf16.msra.mxu1 %v6709_v34 }
 0x590   :  { %3440 = vmatprep.subr.bf16.mxu0 %v6591_v6  ;;  %3481 = vmatprep.subr.bf16.mxu1 %v6715_v40 }
 0x593   :  { %3441 = vmatpush1.bf16.msra.mxu0 %v6597_v8  ;;  %3482 = vmatpush1.bf16.msra.mxu1 %v6733_v46 }
 0x594   :  { %3442 = vmatprep.subr.bf16.mxu0 %v6615_v11  ;;  %3483 = vmatprep.subr.bf16.mxu1 %v6739_v49 }
 0x597   :  { %3443 = vmatpush1.bf16.msra.mxu0 %v6621_v13  ;;  %3484 = vmatpush1.bf16.msra.mxu1 %v6752_v43 }
 0x598   :  { %3444 = vmatprep.subr.bf16.mxu0 %v6639_v16  ;;  %3485 = vmatprep.subr.bf16.mxu1 %v6766_v42 }
 0x59b   :  { %3445 = vmatpush1.bf16.msra.mxu0 %v6645_v17  ;;  %3486 = vmatpush1.bf16.msra.mxu1 %v6761_v30 }
 0x59c   :  { %3446 = vmatprep.subr.bf16.mxu0 %v6668_v22  ;;  %3487 = vmatprep.subr.bf16.mxu1 %v6771_v38 }
 0x59f   :  { %3447 = vmatpush1.bf16.msra.mxu0 %v6663_v21 }
 0x5a0   :  { %3448 = vmatprep.subr.bf16.mxu0 %v6684_v27 }
 0x5a3   :  { %3449 = vmatpush1.bf16.msra.mxu0 %v6697_v31 }
 0x5a4   :  { %3450 = vmatprep.subr.bf16.mxu0 %v6703_v32 }
 0x5a7   :  { %3451 = vmatpush1.bf16.msra.mxu0 %v6721_v41 }
 0x5a8   :  { %3452 = vmatprep.subr.bf16.mxu0 %v6727_v44  ;;  %v6814_v44 = vld [vmem:[%s7004_s3 + $0x1e8] ss:$16 sps:$4 sm:$0xff]  }
 0x5a9   :  { %7220 = vst [vmem:[#allocation25_spill] sm:$0xff] %v6814_v44 }
 0x5ab   :  { %3453 = vmatpush1.bf16.msra.mxu0 %v6745_v51  ;;  %v6808_v51 = vld [vmem:[%s7004_s3 + $0x1ec] ss:$16 sps:$4 sm:$0xff]  }
 0x5ac   :  { %3918 = vmatprep.subr.bf16.mxu0 %v6423_v12  ;;  %v6778_v12 = vld [vmem:[%s7004_s3 + $0x188] ss:$16 sps:$4 sm:$0xff]   ;;  %7219 = vst [vmem:[#allocation31_spill] sm:$0xff] %v6808_v51 }
 0x5ad   :  { %7214 = vst [vmem:[#allocation15_spill] sm:$0xff] %v6778_v12  ;;  %3488 = vmatpush1.bf16.msra.mxu1 %v6778_v12 }
 0x5ae   :  { %3489 = vmatprep.subr.bf16.mxu1 %v6784_v19 }
 0x5b1   :  { %3490 = vmatpush1.bf16.msra.mxu1 %v6790_v37 }
 0x5b2   :  { %3491 = vmatprep.subr.bf16.mxu1 %v6796_v1 }
 0x5b5   :  { %3492 = vmatpush1.bf16.msra.mxu1 %v6802_v62 }
 0x5b6   :  { %3493 = vmatprep.subr.bf16.mxu1 %v6808_v51 }
 0x5b9   :  { %3494 = vmatpush1.bf16.msra.mxu1 %v6814_v44 }
 0x5ba   :  { %3959 = vmatprep.subr.bf16.mxu1 %v6507_v53 }
 0x641   :  { %v2960_v41 = vpop.f32.mrb[20].mxu0  ;;  %v3001_v1 = vpop.f32.mrb[20].mxu1 }
 0x642   :  { %v3008_v32 = vadd.f32 %v2960_v41, %v5778_v0  ;;  %v2962_v37 = vpop.f32.mrb[21].mxu0  ;;  %v3003_v31 = vpop.f32.mrb[21].mxu1  ;;  %v6824_v41 = vld [vmem:[%s7007_s6] sm:$0x1]  ;;  %s3033_s6 = scalar_lea.vmem %s7002_s1, %s4631_s30 }
 0x643   :  { %v2964_v19 = vpop.f32.mrb[22].mxu0  ;;  %v3005_v27 = vpop.f32.mrb[22].mxu1  ;;  %v3009_v38 = vadd.f32 %v2962_v37, %v5782_v60  ;;  %7221 = vst [vmem:[#allocation32_spill] sm:$0xff] %v6824_v41 }
 0x644   :  { %v4629_v62 = vmul.f32 -1.442695, %v3008_v32  ;;  %v2965_v12 = vpop.f32.mrb[23].mxu0  ;;  %v3006_v21 = vpop.f32.mrb[23].mxu1  ;;  %v3023_v27 = vadd.f32 %v6824_v41, %v3003_v31 }
 0x645   :  { %v4630_v22 = vmul.f32 -1.442695, %v3009_v38  ;;  %v6830_v21 = vld [vmem:[%s7006_s5] sm:$0x1]  ;;  %s4698_s5 = sld [smem:[#allocation4 + $0x7]] }
 0x646   :  { %5147 = vpow2.f32 %v4629_v62  ;;  %v3034_v12 = vld [vmem:[%s3033_s6] sm:$0x1] }
 0x647   :  { %5149 = vpow2.f32 %v4630_v22  ;;  %v3022_v22 = vadd.f32 %v6830_v21, %v3001_v1 }
 0x64b   :  { %s3529_s14 = scalar_lea.vmem %s7002_s1, %s4698_s5 }
 0x650   :  { %v5148_v51 = vpop.eup %5147 }
 0x651   :  { %v3016_v44 = vadd.f32 1.0, %v5148_v51  ;;  %v5150_v53 = vpop.eup %5149 }
 0x652   :  { %v3017_v30 = vadd.f32 1.0, %v5150_v53 }
 0x653   :  { %5151 = vrcp.f32 %v3016_v44 }
 0x654   :  { %5153 = vrcp.f32 %v3017_v30  ;;  %v3035_v30 = vmax.f32 %v3034_v12, 0.0  ;;  %v5081_v12 = vld [vmem:[%s7008_s7 + $0x24] ss:$8 sps:$4 sm:$0xff]  }
 0x656   :  { %v3036_v41 = vpack.c.bf16 %v3035_v30, %v3035_v30  ;;  %v5082_v30 = vld [vmem:[%s7008_s7 + $0x30] ss:$8 sps:$4 sm:$0xff]  }
 0x65d   :  { %v5152_v32 = vpop.eup %5151 }
 0x65e   :  { %v3024_v51 = vmul.f32 %v5152_v32, %v3023_v27  ;;  %v5154_v38 = vpop.eup %5153 }
 0x65f   :  { %v3027_v31 = vsub.f32 1.0, %v5154_v38  ;;  %v3029_v62 = vmul.f32 %v5154_v38, %v6434_v59  ;;  %v7222_v59 = vld [vmem:[#allocation14_spill] sm:$0xff] }
 0x660   :  { %v3025_v44 = vadd.f32 %v3024_v51, %v3022_v22  ;;  %v5075_v22 = vld [vmem:[%s7008_s7 + $0x4] ss:$8 sps:$4 sm:$0xff]   ;;  %v5073_v51 = vld [vmem:[%s7008_s7] ss:$8 sps:$4 sm:$0xff]   ;;  %v5076_v38 = vld [vmem:[%s7008_s7 + $0x10] ss:$8 sps:$4 sm:$0xff]  }
 0x662   :  { %5155 = vtanh.f32 %v3025_v44  ;;  %v5078_v44 = vld [vmem:[%s7008_s7 + $0x14] ss:$8 sps:$4 sm:$0xff]  }
 0x66c   :  { %v5156_v19 = vpop.eup %5155 }
 0x66d   :  { %v3028_v37 = vmul.f32 %v5156_v19, %v3027_v31  ;;  %v5079_v31 = vld [vmem:[%s7008_s7 + $0x20] ss:$8 sps:$4 sm:$0xff]   ;;  %v5084_v19 = vld [vmem:[%s7008_s7 + $0x34] ss:$8 sps:$4 sm:$0xff]  }
 0x66f   :  { %v6837_v53 = vadd.f32 %v3029_v62, %v3028_v37  ;;  %v5087_v37 = vld [vmem:[%s7008_s7 + $0x44] ss:$8 sps:$4 sm:$0xff]   ;;  %v5085_v62 = vld [vmem:[%s7008_s7 + $0x40] ss:$8 sps:$4 sm:$0xff]  }
 0x671   :  { %3031 = vst [vmem:[#allocation2 + $0x5] sm:$0x1] %v6837_v53  ;;  %v3037_v1 = vpack.c.bf16 %v6837_v53, %v6837_v53 }
 0x673   :  { %3454 = vmatprep.mubr.bf16.mxu0 %v3037_v1  ;;  %3495 = vmatprep.mubr.bf16.mxu1 %v3037_v1  ;;  %v5088_v1 = vld [vmem:[%s7008_s7 + $0x50] ss:$8 sps:$4 sm:$0xff]  }
 0x674   :  { %3455 = vmatmul.mubr.bf16.vlgmr.msra.gmra.mrb[24].mxu0 %v3036_v41  ;;  %3496 = vmatmul.mubr.bf16.vlgmr.msra.gmra.mrb[24].mxu1 %v3036_v41 }
 0x675   :  { %3919 = vmatpush1.bf16.msra.mxu0 %v6442_v39  ;;  %3960 = vmatpush1.bf16.msra.mxu1 %v6513_v57  ;;  %v7223_v39 = vld [vmem:[#allocation17_spill] sm:$0xff]  ;;  %v7234_v57 = vld [vmem:[#allocation16_spill] sm:$0xff] }
 0x676   :  { %3920 = vmatprep.subr.bf16.mxu0 %v6447_v50  ;;  %3961 = vmatprep.subr.bf16.mxu1 %v6531_v48  ;;  %v7224_v50 = vld [vmem:[#allocation28_spill] sm:$0xff]  ;;  %v7237_v48 = vld [vmem:[#allocation22_spill] sm:$0xff] }
 0x679   :  { %3921 = vmatpush1.bf16.msra.mxu0 %v6453_v55  ;;  %3962 = vmatpush1.bf16.msra.mxu1 %v6537_v7  ;;  %v7225_v55 = vld [vmem:[#allocation12_spill] sm:$0xff]  ;;  %v7238_v7 = vld [vmem:[#allocation25_spill] sm:$0xff] }
 0x67a   :  { %3922 = vmatprep.subr.bf16.mxu0 %v6459_v29  ;;  %3963 = vmatprep.subr.bf16.mxu1 %v6555_v36  ;;  %v7226_v29 = vld [vmem:[#allocation15_spill] sm:$0xff] }
 0x67d   :  { %3923 = vmatpush1.bf16.msra.mxu0 %v6465_v35  ;;  %3964 = vmatpush1.bf16.msra.mxu1 %v6561_v58  ;;  %v7227_v35 = vld [vmem:[#allocation13_spill] sm:$0xff] }
 0x67e   :  { %3924 = vmatprep.subr.bf16.mxu0 %v6471_v26  ;;  %3965 = vmatprep.subr.bf16.mxu1 %v6584_v5  ;;  %v7228_v26 = vld [vmem:[#allocation24_spill] sm:$0xff] }
 0x681   :  { %3925 = vmatpush1.bf16.msra.mxu0 %v6477_v33  ;;  %3966 = vmatpush1.bf16.msra.mxu1 %v6579_v4  ;;  %v7229_v33 = vld [vmem:[#allocation27_spill] sm:$0xff] }
 0x682   :  { %3926 = vmatprep.subr.bf16.mxu0 %v6484_v25  ;;  %3967 = vmatprep.subr.bf16.mxu1 %v6603_v9  ;;  %v7230_v25 = vld [vmem:[#allocation23_spill] sm:$0xff] }
 0x685   :  { %3927 = vmatpush1.bf16.msra.mxu0 %v6489_v47  ;;  %3968 = vmatpush1.bf16.msra.mxu1 %v6609_v10  ;;  %v7231_v47 = vld [vmem:[#allocation19_spill] sm:$0xff] }
 0x686   :  { %3928 = vmatprep.subr.bf16.mxu0 %v6496_v52  ;;  %3969 = vmatprep.subr.bf16.mxu1 %v6627_v14  ;;  %v7232_v52 = vld [vmem:[#allocation29_spill] sm:$0xff] }
 0x689   :  { %3929 = vmatpush1.bf16.msra.mxu0 %v6501_v45  ;;  %3970 = vmatpush1.bf16.msra.mxu1 %v6633_v15  ;;  %v7233_v45 = vld [vmem:[#allocation20_spill] sm:$0xff] }
 0x68a   :  { %3930 = vmatprep.subr.bf16.mxu0 %v6519_v54  ;;  %3971 = vmatprep.subr.bf16.mxu1 %v6651_v18  ;;  %v7235_v54 = vld [vmem:[#allocation21_spill] sm:$0xff] }
 0x68d   :  { %3931 = vmatpush1.bf16.msra.mxu0 %v6525_v63  ;;  %3972 = vmatpush1.bf16.msra.mxu1 %v6657_v20  ;;  %v7236_v63 = vld [vmem:[#allocation31_spill] sm:$0xff] }
 0x68e   :  { %3932 = vmatprep.subr.bf16.mxu0 %v6543_v56  ;;  %3973 = vmatprep.subr.bf16.mxu1 %v6679_v24 }
 0x691   :  { %3933 = vmatpush1.bf16.msra.mxu0 %v6549_v61  ;;  %3974 = vmatpush1.bf16.msra.mxu1 %v6674_v23 }
 0x692   :  { %3934 = vmatprep.subr.bf16.mxu0 %v6567_v2  ;;  %3975 = vmatprep.subr.bf16.mxu1 %v6690_v28 }
 0x695   :  { %3935 = vmatpush1.bf16.msra.mxu0 %v6573_v3  ;;  %3976 = vmatpush1.bf16.msra.mxu1 %v6709_v34  ;;  %v3530_v34 = vld [vmem:[%s3529_s14] sm:$0x1] }
 0x696   :  { %3936 = vmatprep.subr.bf16.mxu0 %v6591_v6  ;;  %3977 = vmatprep.subr.bf16.mxu1 %v6715_v40 }
 0x699   :  { %3937 = vmatpush1.bf16.msra.mxu0 %v6597_v8  ;;  %3978 = vmatpush1.bf16.msra.mxu1 %v6733_v46 }
 0x69a   :  { %3938 = vmatprep.subr.bf16.mxu0 %v6615_v11  ;;  %3979 = vmatprep.subr.bf16.mxu1 %v6739_v49  ;;  %v3531_v49 = vmax.f32 %v3530_v34, 0.0 }
 0x69c   :  { %v3532_v27 = vpack.c.bf16 %v3531_v49, %v3531_v49 }
 0x69d   :  { %3939 = vmatpush1.bf16.msra.mxu0 %v6621_v13  ;;  %3980 = vmatpush1.bf16.msra.mxu1 %v6752_v43 }
 0x69e   :  { %3940 = vmatprep.subr.bf16.mxu0 %v6639_v16  ;;  %3981 = vmatprep.subr.bf16.mxu1 %v6766_v42  ;;  %v7239_v16 = vld [vmem:[#allocation32_spill] sm:$0xff] }
 0x6a1   :  { %3941 = vmatpush1.bf16.msra.mxu0 %v6645_v17  ;;  %3982 = vmatpush1.bf16.msra.mxu1 %v7222_v59  ;;  %v5091_v59 = vld [vmem:[%s7008_s7 + $0x60] ss:$8 sps:$4 sm:$0xff]  }
 0x6a2   :  { %3942 = vmatprep.subr.bf16.mxu0 %v7223_v39  ;;  %3983 = vmatprep.subr.bf16.mxu1 %v7224_v50  ;;  %v5093_v39 = vld [vmem:[%s7008_s7 + $0x64] ss:$8 sps:$4 sm:$0xff]   ;;  %v5096_v50 = vld [vmem:[%s7008_s7 + $0x74] ss:$8 sps:$4 sm:$0xff]  }
 0x6a5   :  { %3943 = vmatpush1.bf16.msra.mxu0 %v7225_v55  ;;  %3984 = vmatpush1.bf16.msra.mxu1 %v7226_v29  ;;  %v5248_v55 = vmov 0   ;;  %v5094_v29 = vld [vmem:[%s7008_s7 + $0x70] ss:$8 sps:$4 sm:$0xff]  }
 0x6a6   :  { %3944 = vmatprep.subr.bf16.mxu0 %v7227_v35  ;;  %3985 = vmatprep.subr.bf16.mxu1 %v7228_v26 }
 0x6a9   :  { %3945 = vmatpush1.bf16.msra.mxu0 %v7229_v33  ;;  %3986 = vmatpush1.bf16.msra.mxu1 %v7230_v25 }
 0x6aa   :  { %3946 = vmatprep.subr.bf16.mxu0 %v7231_v47  ;;  %3987 = vmatprep.subr.bf16.mxu1 %v7232_v52 }
 0x6ad   :  { %3947 = vmatpush1.bf16.msra.mxu0 %v7233_v45  ;;  %3988 = vmatpush1.bf16.msra.mxu1 %v7234_v57 }
 0x6ae   :  { %3948 = vmatprep.subr.bf16.mxu0 %v7235_v54  ;;  %3989 = vmatprep.subr.bf16.mxu1 %v7236_v63 }
 0x6b1   :  { %3949 = vmatpush1.bf16.msra.mxu0 %v7237_v48  ;;  %3990 = vmatpush1.bf16.msra.mxu1 %v7238_v7 }
 0x6b2   :  { %4135 = vmatprep.subr.bf16.mxu0 %v5075_v22 }
 0x747   :  { %v3456_v56 = vpop.f32.mrb[24].mxu0  ;;  %v3497_v61 = vpop.f32.mrb[24].mxu1 }
 0x748   :  { %v3504_v36 = vadd.f32 %v3456_v56, %v5778_v0  ;;  %v3458_v58 = vpop.f32.mrb[25].mxu0  ;;  %v3499_v2 = vpop.f32.mrb[25].mxu1  ;;  %v3518_v20 = vadd.f32 %v6830_v21, %v3497_v61 }
 0x749   :  { %v3460_v3 = vpop.f32.mrb[26].mxu0  ;;  %v3501_v4 = vpop.f32.mrb[26].mxu1  ;;  %v3505_v9 = vadd.f32 %v3458_v58, %v5782_v60  ;;  %v3519_v17 = vadd.f32 %v7239_v16, %v3499_v2 }
 0x74a   :  { %v4696_v5 = vmul.f32 -1.442695, %v3504_v36  ;;  %v3461_v6 = vpop.f32.mrb[27].mxu0  ;;  %v3502_v8 = vpop.f32.mrb[27].mxu1 }
 0x74b   :  { %v4697_v10 = vmul.f32 -1.442695, %v3505_v9 }
 0x74c   :  { %5157 = vpow2.f32 %v4696_v5 }
 0x74d   :  { %5159 = vpow2.f32 %v4697_v10 }
 0x756   :  { %v5158_v11 = vpop.eup %5157 }
 0x757   :  { %v3512_v13 = vadd.f32 1.0, %v5158_v11  ;;  %v5160_v14 = vpop.eup %5159 }
 0x758   :  { %v3513_v15 = vadd.f32 1.0, %v5160_v14 }
 0x759   :  { %5161 = vrcp.f32 %v3512_v13 }
 0x75a   :  { %5163 = vrcp.f32 %v3513_v15  ;;  %v4043_v15 = vld [vmem:[%s7009_s8] sm:$0x3]  ;;  %s5249_s8 = smov [#allocation7]  }
 0x75b   :  { %s4210_s0 = sshll.u32 %s5249_s8, 4  ;;  %s4211_s0 = int_to_ptr.vmem [resolvable:$true] %s4210_s0 }
 0x75c   :  { %s5197_s20 = scalar_lea.vmem %s4211_s0, 16  ;;  %s5201_s21 = scalar_lea.vmem %s4211_s0, 32 }
 0x75d   :  { %p5198_p5 = scmp.ne.s32.totalorder %s4211_s0, %s5197_s20  ;;  %p5202_p6 = scmp.lt.s32.totalorder %s4211_s0, %s4211_s0 }
 0x75e   :  { %p5203_p7 = scmp.lt.s32.totalorder %s5201_s21, %s5197_s20 }
 0x760   :  { %p5204_p8 = por %p5203_p7, %p5202_p6 }
 0x762   :  { %p5205_p9 = pnand %p5204_p8, %p5198_p5 }
 0x763   :  { %v5162_v18 = vpop.eup %5161 }
 0x764   :  { %v3520_v23 = vmul.f32 %v5162_v18, %v3519_v17  ;;  %v5164_v28 = vpop.eup %5163 }
 0x765   :  { %v3523_v40 = vsub.f32 1.0, %v5164_v28  ;;  %v3525_v42 = vmul.f32 %v5164_v28, %v6837_v53  ;;  %v5090_v53 = vld [vmem:[%s7008_s7 + $0x54] ss:$8 sps:$4 sm:$0xff]  }
 0x766   :  { %v3521_v24 = vadd.f32 %v3520_v23, %v3518_v20 }
 0x768   :  { %5165 = vtanh.f32 %v3521_v24 }
 0x772   :  { %v5166_v46 = vpop.eup %5165 }
 0x773   :  { %v3524_v43 = vmul.f32 %v5166_v46, %v3523_v40 }
 0x775   :  { %v6912_v41 = vadd.f32 %v3525_v42, %v3524_v43 }
 0x777   :  { %3527 = vst [vmem:[#allocation2 + $0x6] sm:$0x1] %v6912_v41  ;;  %v3533_v32 = vpack.c.bf16 %v6912_v41, %v6912_v41 }
 0x779   :  { %3950 = vmatprep.mubr.bf16.mxu0 %v3533_v32  ;;  %3991 = vmatprep.mubr.bf16.mxu1 %v3533_v32 }
 0x77a   :  { %3951 = vmatmul.mubr.bf16.vlgmr.msra.gmra.mrb[28].mxu0 %v3532_v27  ;;  %3992 = vmatmul.mubr.bf16.vlgmr.msra.gmra.mrb[28].mxu1 %v3532_v27 }
 0x77b   :  { %4136 = vmatpush1.bf16.msra.mxu0 %v5073_v51  ;;  %4167 = vmatprep.mubr.bf16.mxu0 %v5248_v55 }
 0x77c   :  { %4137 = vmatprep.subr.bf16.mxu0 %v5078_v44 }
 0x77f   :  { %4138 = vmatpush1.bf16.msra.mxu0 %v5076_v38 }
 0x780   :  { %4139 = vmatprep.subr.bf16.mxu0 %v5081_v12 }
 0x783   :  { %4140 = vmatpush1.bf16.msra.mxu0 %v5079_v31 }
 0x784   :  { %4141 = vmatprep.subr.bf16.mxu0 %v5084_v19 }
 0x787   :  { %4142 = vmatpush1.bf16.msra.mxu0 %v5082_v30 }
 0x788   :  { %4143 = vmatprep.subr.bf16.mxu0 %v5087_v37 }
 0x78b   :  { %4144 = vmatpush1.bf16.msra.mxu0 %v5085_v62 }
 0x78c   :  { %4145 = vmatprep.subr.bf16.mxu0 %v5090_v53 }
 0x78f   :  { %4146 = vmatpush1.bf16.msra.mxu0 %v5088_v1 }
 0x790   :  { %4147 = vmatprep.subr.bf16.mxu0 %v5093_v39 }
 0x793   :  { %4148 = vmatpush1.bf16.msra.mxu0 %v5091_v59 }
 0x794   :  { %4149 = vmatprep.subr.bf16.mxu0 %v5096_v50 }
 0x797   :  { %4150 = vmatpush1.bf16.msra.mxu0 %v5094_v29 }
 0x84d   :  { %v3952_v35 = vpop.f32.mrb[28].mxu0  ;;  %v3993_v26 = vpop.f32.mrb[28].mxu1 }
 0x84e   :  { %v4000_v33 = vadd.f32 %v3952_v35, %v5778_v0  ;;  %v3954_v25 = vpop.f32.mrb[29].mxu0  ;;  %v3995_v47 = vpop.f32.mrb[29].mxu1  ;;  %v4014_v3 = vadd.f32 %v6830_v21, %v3993_v26  ;;  %v7240_v21 = vld [vmem:[#allocation30_spill] sm:$0xff] }
 0x84f   :  { %v3956_v52 = vpop.f32.mrb[30].mxu0  ;;  %v3997_v45 = vpop.f32.mrb[30].mxu1  ;;  %v4001_v48 = vadd.f32 %v3954_v25, %v5782_v60  ;;  %v4015_v2 = vadd.f32 %v7239_v16, %v3995_v47  ;;  %v7241_v16 = vsub.s32 0, %v7240_v21  ;;  %v7242_v18 = vsub.s32 1, %v7240_v21 }
 0x850   :  { %v4763_v57 = vmul.f32 -1.442695, %v4000_v33  ;;  %v3957_v54 = vpop.f32.mrb[31].mxu0  ;;  %v3998_v63 = vpop.f32.mrb[31].mxu1 }
 0x851   :  { %v4764_v7 = vmul.f32 -1.442695, %v4001_v48  ;;  %v4048_v17 = vrot.slane %v4043_v15, %v7241_v16  ;;  %v4052_v20 = vrot.slane %v4043_v15, %v7242_v18 }
 0x852   :  { %5167 = vpow2.f32 %v4763_v57 }
 0x853   :  { %5169 = vpow2.f32 %v4764_v7 }
 0x85c   :  { %v5168_v56 = vpop.eup %5167 }
 0x85d   :  { %v4008_v61 = vadd.f32 1.0, %v5168_v56  ;;  %v5170_v36 = vpop.eup %5169 }
 0x85e   :  { %v4009_v58 = vadd.f32 1.0, %v5170_v36 }
 0x85f   :  { %5171 = vrcp.f32 %v4008_v61 }
 0x860   :  { %5173 = vrcp.f32 %v4009_v58 }
 0x869   :  { %v5172_v0 = vpop.eup %5171 }
 0x86a   :  { %v4016_v4 = vmul.f32 %v5172_v0, %v4015_v2  ;;  %v5174_v6 = vpop.eup %5173 }
 0x86b   :  { %v4019_v8 = vsub.f32 1.0, %v5174_v6  ;;  %v4021_v9 = vmul.f32 %v5174_v6, %v6912_v41 }
 0x86c   :  { %v4017_v5 = vadd.f32 %v4016_v4, %v4014_v3 }
 0x86e   :  { %5175 = vtanh.f32 %v4017_v5 }
 0x878   :  { %v5176_v60 = vpop.eup %5175 }
 0x879   :  { %v4020_v10 = vmul.f32 %v5176_v60, %v4019_v8 }
 0x87b   :  { %v4022_v11 = vadd.f32 %v4021_v9, %v4020_v10 }
 0x87d   :  { %4023 = vst [vmem:[#allocation2 + $0x7] sm:$0x1] %v4022_v11  ;;  %4024 = vst [vmem:[#allocation7] sm:$0x1] %v4022_v11 }
 0x884   :  { %v4025_v13 = vld [vmem:[#allocation2] sm:$0xff] }
 0x885   :  { %v4026_v14 = vpack.c.bf16 %v4025_v13, %v4025_v13 }
 0x887   :  { %4168 = vmatmul.mubr.bf16.vlgmr.msra.gmra.mrb[32].mxu0 %v4026_v14 }
 0x95a   :  { %v4169_v23 = vpop.f32.mrb[32].mxu0 }
 0x95b   :  { %v4170_v24 = vadd.f32 %v4169_v23, %v4048_v17  ;;  %v4171_v28 = vpop.f32.mrb[33].mxu0 }
 0x95c   :  { %v4172_v34 = vadd.f32 %v4171_v28, %v4052_v20  ;;  %v4173_v40 = vpop.f32.mrb[34].mxu0 }
 0x95d   :  { %v4174_v46 = vpop.f32.mrb[35].mxu0 }
 0x95e   :  { %v4176_v49 = vmax.f32 %v4170_v24, %v4172_v34 }
 0x960   :  { %4177 = vmax.xlane.f32.xlu0 %v4176_v49 }
 0x9ed   :  { %v4178_v43 = vpop.xlane.xlu0 %4177 }
 0x9ee   :  { %v4179_v42 = vsub.f32 %v4170_v24, %v4178_v43  ;;  %v4180_v41 = vsub.f32 %v4172_v34, %v4178_v43 }
 0x9f0   :  { %v4181_v27 = vmul.f32 1.442695, %v4179_v42  ;;  %v4183_v32 = vmul.f32 1.442695, %v4180_v41 }
 0x9f2   :  { %5177 = vpow2.f32 %v4181_v27 }
 0x9f3   :  { %5179 = vpow2.f32 %v4183_v32 }
 0x9fc   :  { %v5178_v22 = vpop.eup %5177 }
 0x9fd   :  { %v5180_v51 = vpop.eup %5179 }
 0x9fe   :  { %v4185_v44 = vadd.f32 %v5180_v51, %v5178_v22 }
 0xa00   :  { %4186 = vadd.xlane.f32.xlu0 %v4185_v44 }
 0xa01   :  { %5208 = shalt.err (!%p5205_p9)
}
 0xa02   :  { %s5209_s4 = scalar_lea.hbm %s7011_s10, 16 }
 0xa03   :  { %p5210_p10 = scmp.ne.s32.totalorder %s7011_s10, %s5209_s4  ;;  %p5213_p11 = scmp.lt.u32.totalorder %s5209_s4, %s7011_s10 }
 0xa05   :  { %p5215_p12 = pnand %p5213_p11, %p5210_p10 }
 0xa07   :  { %5218 = shalt.err (!%p5215_p12)
}
 0xa08   :  { %4213 = dma.vmem_to_hbm [thread:$0]  %s4211_s0, 16, %s7011_s10, [#allocation8]  }
 0xa09   :  { %s5250_s29 = smov [#allocation5]  }
 0xa0a   :  { %s4200_s30 = sshll.u32 %s5250_s29, 4  ;;  %s4201_s30 = int_to_ptr.vmem [resolvable:$true] %s4200_s30 }
 0xa0b   :  { %s5219_s11 = scalar_lea.vmem %s4201_s30, 256  ;;  %p5224_p0 = scmp.lt.s32.totalorder %s4201_s30, %s4201_s30 }
 0xa0c   :  { %p5220_p13 = scmp.ne.s32.totalorder %s4201_s30, %s5219_s11  ;;  %p5225_p1 = scmp.lt.s32.totalorder %s5219_s11, %s5219_s11 }
 0xa0e   :  { %p5226_p2 = por %p5225_p1, %p5224_p0 }
 0xa10   :  { %p5227_p3 = pnand %p5226_p2, %p5220_p13 }
 0xa8d   :  { %v4187_v38 = vpop.xlane.xlu0 %4186 }
 0xa8e   :  { %5181 = vlog2.f32 %v4187_v38 }
 0xa98   :  { %v5182_v12 = vpop.eup %5181 }
 0xa99   :  { %v4189_v31 = vmul.f32 0.6931472, %v5182_v12 }
 0xa9b   :  { %v4190_v19 = vsub.f32 %v4179_v42, %v4189_v31  ;;  %v4191_v30 = vsub.f32 %v4180_v41, %v4189_v31 }
 0xa9d   :  { %4192 = vst [vmem:[#allocation5] sm:$0xff] %v4190_v19  ;;  %4193 = vst [vmem:[#allocation5 + $0x8] sm:$0xff] %v4191_v30 }
 0xa9e   :  { %5230 = shalt.err (!%p5227_p3)
}
 0xa9f   :  { %s5231_s6 = scalar_lea.hbm %s7010_s9, 256 }
 0xaa0   :  { %p5232_p4 = scmp.ne.s32.totalorder %s7010_s9, %s5231_s6  ;;  %p5235_p5 = scmp.lt.u32.totalorder %s5231_s6, %s7010_s9 }
 0xaa2   :  { %p5237_p6 = pnand %p5235_p5, %p5232_p4 }
 0xaa4   :  { %5240 = shalt.err (!%p5237_p6)
}
 0xaa5   :  { %4203 = dma.vmem_to_hbm [thread:$0]  %s4201_s30, 256, %s7010_s9, [#allocation6]  }
 0xaa6   :  { %5243 = dma.done.wait [#allocation6], 256  }
 0xaa7   :  { %5244 = vsyncadd [#allocation6], 4294967040 }
 0xaa8   :  { %5245 = dma.done.wait [#allocation8], 16  }
 0xaa9   :  { %5246 = vsyncadd [#allocation8], 4294967280 }
 0xaaa   :  { %4220 = vsyncpa [#allocation6], 1 }
 0xaab   :  { %4221 = vsyncpa [#allocation8], 1 }

</bundles_post_ra>
